<compile_context>
chip_gen: v7x
topology: tpu7x:2x2x1
jax: 0.10.0
libtpu: 0.0.40
codegen_flags: <defaults>
</compile_context>

<pallas_src>
import jax
import jax.numpy as jnp
from jax.experimental import pallas as pl
from jax.experimental.pallas import tpu as pltpu  # noqa: F401  (TPU backend assumed)

NB_HIDDEN = 128


# ---------------------------------------------------------------------------
# Kernel 1: conv1 + 2x2 max-pool + ReLU (fused), lane-dense [32, S] output.
# ---------------------------------------------------------------------------
def _conv1_pool_relu_kernel(p_ref, w_ref, b_ref, o_ref):
    # p_ref: [4, 9, S]   4 pool corners, 9 conv taps (t = i*3+j), S = 2B*6*6
    #                    columns ordered (n, ph, pw)
    # w_ref: [32, 9]     conv1 weight, rows = out channel, cols = tap
    # b_ref: [32, 1]     conv1 bias
    # o_ref: [32, S]     relu(maxpool(conv1)) in channel-major layout
    w = w_ref[...]
    m = jnp.dot(w, p_ref[0], preferred_element_type=jnp.float32)
    for k in range(1, 4):
        m = jnp.maximum(m, jnp.dot(w, p_ref[k], preferred_element_type=jnp.float32))
    # max-then-bias == bias-then-max (bias is per-channel), ReLU after pool.
    o_ref[...] = jnp.maximum(m + b_ref[...], 0.0)


# ---------------------------------------------------------------------------
# Kernel 2: conv2 + 2x2 max-pool + ReLU + flatten + fc1 + ReLU + fc2 (fused).
# ---------------------------------------------------------------------------
def _conv2_pool_fc_kernel(p_ref, w2_ref, b2_ref, fc1w_ref, fc1b_ref,
                          fc2w_ref, fc2b_ref, o_ref):
    # p_ref:   [4, 4, N, 288]  (pool corner k, pooled position pos = qh*2+qw,
    #                           batch row n, im2col column t*32 + cin)
    # w2_ref:  [288, 64], b2_ref: [1, 64]
    # fc1w_ref:[256, H]  rows ordered (qh, qw, cin)  (NCHW flatten pre-folded)
    # fc1b_ref:[1, H]
    # fc2w_ref:[H, 128]  (10 real classes, zero-padded to 128 lanes)
    # fc2b_ref:[1, 128]
    # o_ref:   [N, 128]  lane-dense logits (first 10 lanes are the real classes)
    w2 = w2_ref[...]
    acc = None
    for pos in range(4):                       # pooled 2x2 output positions
        z = jnp.dot(p_ref[0, pos], w2, preferred_element_type=jnp.float32)
        for k in range(1, 4):                  # max over the 4 pool corners
            z = jnp.maximum(
                z, jnp.dot(p_ref[k, pos], w2, preferred_element_type=jnp.float32))
        z = jnp.maximum(z + b2_ref[...], 0.0)  # [N, 64]
        # Flatten is implicit: each pooled position hits its own 64-row slice
        # of fc1's (pre-permuted) weight, accumulated into the fc1 pre-activation.
        d = jnp.dot(z, fc1w_ref[pos * 64:(pos + 1) * 64, :],
                    preferred_element_type=jnp.float32)
        acc = d if acc is None else acc + d
    h = jnp.maximum(acc + fc1b_ref[...], 0.0)  # [N, H]
    out = jnp.dot(h, fc2w_ref[...], preferred_element_type=jnp.float32) + fc2b_ref[...]
    o_ref[...] = out.astype(o_ref.dtype)


# ---------------------------------------------------------------------------
# Plain-JAX glue: corner-separated im2col (static slices, fused by XLA).
# ---------------------------------------------------------------------------
def _conv1_pool_patches(xs):
    """xs: [N, 14, 14] -> [4, 9, N*36].

    For pool corner (dh, dw) and tap (i, j), column (n, ph, pw) holds
    xs[n, 2*ph + dh + i, 2*pw + dw + j]."""
    n = xs.shape[0]
    corners = []
    for dh in range(2):
        for dw in range(2):
            taps = [xs[:, dh + i:dh + i + 11:2, dw + j:dw + j + 11:2].reshape(n * 36)
                    for i in range(3) for j in range(3)]
            corners.append(jnp.stack(taps, axis=0))          # [9, N*36]
    return jnp.stack(corners, axis=0)                        # [4, 9, N*36]


def _conv2_pool_fc_patches(h1, n):
    """h1: [32, N*36] (channel-major conv1+pool output) -> [4, 4, N, 288].

    Index order: [corner k, pooled pos qh*2+qw, batch n, column t*32 + cin]."""
    h = h1.reshape(32, n, 6, 6)                               # (cin, n, ph, pw)
    corners = []
    for dh in range(2):
        for dw in range(2):
            taps = [h[:, :, dh + i:dh + i + 3:2, dw + j:dw + j + 3:2]   # [32, N, 2, 2]
                    for i in range(3) for j in range(3)]
            p = jnp.stack(taps, axis=0)                       # (t, cin, n, qh, qw)
            p = p.transpose(3, 4, 2, 0, 1)                    # (qh, qw, n, t, cin)
            corners.append(p.reshape(4, n, 9 * 32))           # [4(pos), N, 288]
    return jnp.stack(corners, axis=0)                         # [4, 4, N, 288]


# ---------------------------------------------------------------------------
# Forward pass (2 pallas_calls)
# ---------------------------------------------------------------------------
def forward(x, params):
    """x: [B, 2, 14, 14] -> logits [2B, 10] (matches torch forward_single on
    x.reshape(-1, 1, 14, 14))."""
    B = x.shape[0]
    N = 2 * B
    xs = x.reshape(N, 14, 14).astype(jnp.float32)

    # conv1 + pool + relu
    p1 = _conv1_pool_patches(xs)                              # [4, 9, N*36]
    h1 = pl.pallas_call(
        _conv1_pool_relu_kernel,
        out_shape=jax.ShapeDtypeStruct((32, N * 36), jnp.float32),
    )(p1, params["w1"], params["b1"])                         # [32, N*36]

    # conv2 + pool + relu + flatten + fc1 + relu + fc2
    p2 = _conv2_pool_fc_patches(h1, N)                        # [4, 4, N, 288]
    logits_pad = pl.pallas_call(
        _conv2_pool_fc_kernel,
        out_shape=jax.ShapeDtypeStruct((N, 128), jnp.float32),
    )(p2, params["w2"], params["b2"],
      params["fc1_w"], params["fc1_b"], params["fc2_w"], params["fc2_b"])

    return logits_pad[:, :10]                                 # [2B, 10]


# ---------------------------------------------------------------------------
# Parameters: PyTorch-layout init + one-time kernel-layout preparation.
# ---------------------------------------------------------------------------
def init_torch_params(key, nb_hidden=NB_HIDDEN):
    """Synthetic init in the PyTorch layouts (uniform(-1/sqrt(fan_in), ...))."""
    ks = jax.random.split(key, 8)

    def u(k, shape, fan_in):
        bound = 1.0 / (fan_in ** 0.5)
        return jax.random.uniform(k, shape, jnp.float32, -bound, bound)

    return {
        "conv1_w": u(ks[0], (32, 1, 3, 3), 9),
        "conv1_b": u(ks[1], (32,), 9),
        "conv2_w": u(ks[2], (64, 32, 3, 3), 32 * 9),
        "conv2_b": u(ks[3], (64,), 32 * 9),
        "fc1_w":   u(ks[4], (nb_hidden, 256), 256),   # torch Linear: [out, in]
        "fc1_b":   u(ks[5], (nb_hidden,), 256),
        "fc2_w":   u(ks[6], (10, nb_hidden), nb_hidden),
        "fc2_b":   u(ks[7], (10,), nb_hidden),
    }


def prepare_params(tp):
    """One-time transform of torch-layout weights into the kernel layouts:
       - conv weights reshaped to matmul form (column order matches im2col),
       - the NCHW flatten permutation folded into fc1's rows,
       - fc2 zero-padded to 128 output lanes for a lane-dense final store."""
    nb = tp["fc1_w"].shape[0]
    w1 = tp["conv1_w"].reshape(32, 9)                               # [co, t]
    b1 = tp["conv1_b"].reshape(32, 1)
    w2 = tp["conv2_w"].transpose(2, 3, 1, 0).reshape(9 * 32, 64)    # rows (i, j, cin)
    b2 = tp["conv2_b"].reshape(1, 64)
    # torch flatten of [N, 64, 2, 2] is (cin, qh, qw); our features are (qh, qw, cin).
    fc1_w = tp["fc1_w"].reshape(nb, 64, 2, 2).transpose(2, 3, 1, 0).reshape(256, nb)
    fc1_b = tp["fc1_b"].reshape(1, nb)
    fc2_w = jnp.zeros((nb, 128), jnp.float32).at[:, :10].set(tp["fc2_w"].T)
    fc2_b = jnp.zeros((1, 128), jnp.float32).at[:, :10].set(tp["fc2_b"])
    return {"w1": w1, "b1": b1, "w2": w2, "b2": b2,
            "fc1_w": fc1_w, "fc1_b": fc1_b, "fc2_w": fc2_w, "fc2_b": fc2_b}


# ---------------------------------------------------------------------------
# Independent pure-JAX reference (for the ordering unit test the review asked for)
# ---------------------------------------------------------------------------
def reference_forward(x, tp):
    hp = jax.lax.Precision.HIGHEST
    N = x.shape[0] * 2
    y = x.reshape(N, 1, 14, 14).astype(jnp.float32)
    y = jax.lax.conv_general_dilated(y, tp["conv1_w"], (1, 1), "VALID",
                                     dimension_numbers=("NCHW", "OIHW", "NCHW"),
                                     precision=hp) + tp["conv1_b"].reshape(1, -1, 1, 1)
    y = jax.lax.reduce_window(y, -jnp.inf, jax.lax.max, (1, 1, 2, 2), (1, 1, 2, 2), "VALID")
    y = jnp.maximum(y, 0.0)
    y = jax.lax.conv_general_dilated(y, tp["conv2_w"], (1, 1), "VALID",
                                     dimension_numbers=("NCHW", "OIHW", "NCHW"),
                                     precision=hp) + tp["conv2_b"].reshape(1, -1, 1, 1)
    y = jax.lax.reduce_window(y, -jnp.inf, jax.lax.max, (1, 1, 2, 2), (1, 1, 2, 2), "VALID")
    y = jnp.maximum(y, 0.0)
    y = y.reshape(N, 256)                                    # NCHW flatten
    y = jnp.maximum(jnp.dot(y, tp["fc1_w"].T, precision=hp) + tp["fc1_b"], 0.0)
    return jnp.dot(y, tp["fc2_w"].T, precision=hp) + tp["fc2_b"]


if __name__ == "__main__":
    key = jax.random.PRNGKey(0)
    pkey, xkey = jax.random.split(key)
    torch_params = init_torch_params(pkey)
    params = prepare_params(torch_params)        # one-time weight re-layout

    # Input implied by the module docstring: [mini_batch_size, 2, 14, 14]
    B = 2
    x = jax.random.normal(xkey, (B, 2, 14, 14), jnp.float32)

    fwd = jax.jit(forward)
    out = fwd(x, params)
    jax.block_until_ready(out)

    assert out.shape == (2 * B, 10) and out.dtype == jnp.float32

    # Ordering / numerics check vs an independent XLA reference.  Tolerance is
    # loose vs MXU f32 pass precision but far below the O(0.3) logit scale, so
    # it would still catch any element-ordering drift.
    ref = reference_forward(x, torch_params)
    max_err = float(jnp.max(jnp.abs(out - ref)))
    assert max_err < 3e-2, f"mismatch vs reference: max abs err = {max_err}"

    print("KERNEL_OK")
</pallas_src>

<mosaic_0001>
module attributes {stable_mosaic.version = 11 : i64} {
  func.func @_conv1_pool_relu_kernel(%arg0: memref<4x9x144xf32, #tpu.memory_space<vmem>>, %arg1: memref<32x9xf32, #tpu.memory_space<vmem>>, %arg2: memref<32x1xf32, #tpu.memory_space<vmem>>, %arg3: memref<32x144xf32, #tpu.memory_space<vmem>>) attributes {dimension_semantics = [], scalar_prefetch = 0 : i64, scratch_operands = 0 : i64, tpu.core_type = #tpu.core_type<tc>} {
    %c0 = arith.constant 0 : index
    %c0_0 = arith.constant 0 : index
    %0 = vector.load %arg1[%c0, %c0_0] : memref<32x9xf32, #tpu.memory_space<vmem>>, vector<32x9xf32>
    %c0_1 = arith.constant 0 : index
    %c0_2 = arith.constant 0 : index
    %c0_3 = arith.constant 0 : index
    %1 = vector.load %arg0[%c0_1, %c0_2, %c0_3] : memref<4x9x144xf32, #tpu.memory_space<vmem>>, vector<1x9x144xf32>
    %2 = vector.shape_cast %1 : vector<1x9x144xf32> to vector<9x144xf32>
    %cst = arith.constant dense<0.000000e+00> : vector<32x144xf32>
    %3 = tpu.matmul %0, %2, %cst {dimension_numbers = #tpu.dot_dimension_numbers<[1], [0], [0], [1], [0, 0, 1, 1], [], []>} : vector<32x9xf32>, vector<9x144xf32>, vector<32x144xf32> -> vector<32x144xf32>
    %c1 = arith.constant 1 : index
    %c0_4 = arith.constant 0 : index
    %c0_5 = arith.constant 0 : index
    %4 = vector.load %arg0[%c1, %c0_4, %c0_5] : memref<4x9x144xf32, #tpu.memory_space<vmem>>, vector<1x9x144xf32>
    %5 = vector.shape_cast %4 : vector<1x9x144xf32> to vector<9x144xf32>
    %cst_6 = arith.constant dense<0.000000e+00> : vector<32x144xf32>
    %6 = tpu.matmul %0, %5, %cst_6 {dimension_numbers = #tpu.dot_dimension_numbers<[1], [0], [0], [1], [0, 0, 1, 1], [], []>} : vector<32x9xf32>, vector<9x144xf32>, vector<32x144xf32> -> vector<32x144xf32>
    %7 = arith.maximumf %3, %6 : vector<32x144xf32>
    %c2 = arith.constant 2 : index
    %c0_7 = arith.constant 0 : index
    %c0_8 = arith.constant 0 : index
    %8 = vector.load %arg0[%c2, %c0_7, %c0_8] : memref<4x9x144xf32, #tpu.memory_space<vmem>>, vector<1x9x144xf32>
    %9 = vector.shape_cast %8 : vector<1x9x144xf32> to vector<9x144xf32>
    %cst_9 = arith.constant dense<0.000000e+00> : vector<32x144xf32>
    %10 = tpu.matmul %0, %9, %cst_9 {dimension_numbers = #tpu.dot_dimension_numbers<[1], [0], [0], [1], [0, 0, 1, 1], [], []>} : vector<32x9xf32>, vector<9x144xf32>, vector<32x144xf32> -> vector<32x144xf32>
    %11 = arith.maximumf %7, %10 : vector<32x144xf32>
    %c3 = arith.constant 3 : index
    %c0_10 = arith.constant 0 : index
    %c0_11 = arith.constant 0 : index
    %12 = vector.load %arg0[%c3, %c0_10, %c0_11] : memref<4x9x144xf32, #tpu.memory_space<vmem>>, vector<1x9x144xf32>
    %13 = vector.shape_cast %12 : vector<1x9x144xf32> to vector<9x144xf32>
    %cst_12 = arith.constant dense<0.000000e+00> : vector<32x144xf32>
    %14 = tpu.matmul %0, %13, %cst_12 {dimension_numbers = #tpu.dot_dimension_numbers<[1], [0], [0], [1], [0, 0, 1, 1], [], []>} : vector<32x9xf32>, vector<9x144xf32>, vector<32x144xf32> -> vector<32x144xf32>
    %15 = arith.maximumf %11, %14 : vector<32x144xf32>
    %c0_13 = arith.constant 0 : index
    %c0_14 = arith.constant 0 : index
    %16 = vector.load %arg2[%c0_13, %c0_14] : memref<32x1xf32, #tpu.memory_space<vmem>>, vector<32x1xf32>
    %17 = vector.broadcast %16 : vector<32x1xf32> to vector<32x144xf32>
    %18 = arith.addf %15, %17 : vector<32x144xf32>
    %cst_15 = arith.constant 0.000000e+00 : f32
    %19 = vector.broadcast %cst_15 : f32 to vector<32x144xf32>
    %20 = arith.maximumf %18, %19 : vector<32x144xf32>
    %c0_16 = arith.constant 0 : index
    %c0_17 = arith.constant 0 : index
    %21 = vector.load %arg3[%c0_16, %c0_17] : memref<32x144xf32, #tpu.memory_space<vmem>>, vector<32x144xf32>
    tpu.vector_store %arg3[%c0_16, %c0_17], %20 {strides = array<i32>} : memref<32x144xf32, #tpu.memory_space<vmem>>, vector<32x144xf32>,
    return
  }
}

module attributes {stable_mosaic.version = 11 : i64} {
  func.func @_conv2_pool_fc_kernel(%arg0: memref<4x4x4x288xf32, #tpu.memory_space<vmem>>, %arg1: memref<288x64xf32, #tpu.memory_space<vmem>>, %arg2: memref<1x64xf32, #tpu.memory_space<vmem>>, %arg3: memref<256x128xf32, #tpu.memory_space<vmem>>, %arg4: memref<1x128xf32, #tpu.memory_space<vmem>>, %arg5: memref<128x128xf32, #tpu.memory_space<vmem>>, %arg6: memref<1x128xf32, #tpu.memory_space<vmem>>, %arg7: memref<4x128xf32, #tpu.memory_space<vmem>>) attributes {dimension_semantics = [], scalar_prefetch = 0 : i64, scratch_operands = 0 : i64, tpu.core_type = #tpu.core_type<tc>} {
    %c0 = arith.constant 0 : index
    %c0_0 = arith.constant 0 : index
    %0 = vector.load %arg1[%c0, %c0_0] : memref<288x64xf32, #tpu.memory_space<vmem>>, vector<288x64xf32>
    %c0_1 = arith.constant 0 : index
    %c0_2 = arith.constant 0 : index
    %c0_3 = arith.constant 0 : index
    %c0_4 = arith.constant 0 : index
    %1 = vector.load %arg0[%c0_1, %c0_2, %c0_3, %c0_4] : memref<4x4x4x288xf32, #tpu.memory_space<vmem>>, vector<1x1x4x288xf32>
    %2 = vector.shape_cast %1 : vector<1x1x4x288xf32> to vector<4x288xf32>
    %cst = arith.constant dense<0.000000e+00> : vector<4x64xf32>
    %3 = tpu.matmul %2, %0, %cst {dimension_numbers = #tpu.dot_dimension_numbers<[1], [0], [0], [1], [0, 0, 1, 1], [], []>} : vector<4x288xf32>, vector<288x64xf32>, vector<4x64xf32> -> vector<4x64xf32>
    %c1 = arith.constant 1 : index
    %c0_5 = arith.constant 0 : index
    %c0_6 = arith.constant 0 : index
    %c0_7 = arith.constant 0 : index
    %4 = vector.load %arg0[%c1, %c0_5, %c0_6, %c0_7] : memref<4x4x4x288xf32, #tpu.memory_space<vmem>>, vector<1x1x4x288xf32>
    %5 = vector.shape_cast %4 : vector<1x1x4x288xf32> to vector<4x288xf32>
    %cst_8 = arith.constant dense<0.000000e+00> : vector<4x64xf32>
    %6 = tpu.matmul %5, %0, %cst_8 {dimension_numbers = #tpu.dot_dimension_numbers<[1], [0], [0], [1], [0, 0, 1, 1], [], []>} : vector<4x288xf32>, vector<288x64xf32>, vector<4x64xf32> -> vector<4x64xf32>
    %7 = arith.maximumf %3, %6 : vector<4x64xf32>
    %c2 = arith.constant 2 : index
    %c0_9 = arith.constant 0 : index
    %c0_10 = arith.constant 0 : index
    %c0_11 = arith.constant 0 : index
    %8 = vector.load %arg0[%c2, %c0_9, %c0_10, %c0_11] : memref<4x4x4x288xf32, #tpu.memory_space<vmem>>, vector<1x1x4x288xf32>
    %9 = vector.shape_cast %8 : vector<1x1x4x288xf32> to vector<4x288xf32>
    %cst_12 = arith.constant dense<0.000000e+00> : vector<4x64xf32>
    %10 = tpu.matmul %9, %0, %cst_12 {dimension_numbers = #tpu.dot_dimension_numbers<[1], [0], [0], [1], [0, 0, 1, 1], [], []>} : vector<4x288xf32>, vector<288x64xf32>, vector<4x64xf32> -> vector<4x64xf32>
    %11 = arith.maximumf %7, %10 : vector<4x64xf32>
    %c3 = arith.constant 3 : index
    %c0_13 = arith.constant 0 : index
    %c0_14 = arith.constant 0 : index
    %c0_15 = arith.constant 0 : index
    %12 = vector.load %arg0[%c3, %c0_13, %c0_14, %c0_15] : memref<4x4x4x288xf32, #tpu.memory_space<vmem>>, vector<1x1x4x288xf32>
    %13 = vector.shape_cast %12 : vector<1x1x4x288xf32> to vector<4x288xf32>
    %cst_16 = arith.constant dense<0.000000e+00> : vector<4x64xf32>
    %14 = tpu.matmul %13, %0, %cst_16 {dimension_numbers = #tpu.dot_dimension_numbers<[1], [0], [0], [1], [0, 0, 1, 1], [], []>} : vector<4x288xf32>, vector<288x64xf32>, vector<4x64xf32> -> vector<4x64xf32>
    %15 = arith.maximumf %11, %14 : vector<4x64xf32>
    %c0_17 = arith.constant 0 : index
    %c0_18 = arith.constant 0 : index
    %16 = vector.load %arg2[%c0_17, %c0_18] : memref<1x64xf32, #tpu.memory_space<vmem>>, vector<1x64xf32>
    %17 = vector.broadcast %16 : vector<1x64xf32> to vector<4x64xf32>
    %18 = arith.addf %15, %17 : vector<4x64xf32>
    %cst_19 = arith.constant 0.000000e+00 : f32
    %19 = vector.broadcast %cst_19 : f32 to vector<4x64xf32>
    %20 = arith.maximumf %18, %19 : vector<4x64xf32>
    %c0_20 = arith.constant 0 : index
    %c0_21 = arith.constant 0 : index
    %21 = vector.load %arg3[%c0_20, %c0_21] : memref<256x128xf32, #tpu.memory_space<vmem>>, vector<64x128xf32>
    %cst_22 = arith.constant dense<0.000000e+00> : vector<4x128xf32>
    %22 = tpu.matmul %20, %21, %cst_22 {dimension_numbers = #tpu.dot_dimension_numbers<[1], [0], [0], [1], [0, 0, 1, 1], [], []>} : vector<4x64xf32>, vector<64x128xf32>, vector<4x128xf32> -> vector<4x128xf32>
    %c0_23 = arith.constant 0 : index
    %c1_24 = arith.constant 1 : index
    %c0_25 = arith.constant 0 : index
    %c0_26 = arith.constant 0 : index
    %23 = vector.load %arg0[%c0_23, %c1_24, %c0_25, %c0_26] : memref<4x4x4x288xf32, #tpu.memory_space<vmem>>, vector<1x1x4x288xf32>
    %24 = vector.shape_cast %23 : vector<1x1x4x288xf32> to vector<4x288xf32>
    %cst_27 = arith.constant dense<0.000000e+00> : vector<4x64xf32>
    %25 = tpu.matmul %24, %0, %cst_27 {dimension_numbers = #tpu.dot_dimension_numbers<[1], [0], [0], [1], [0, 0, 1, 1], [], []>} : vector<4x288xf32>, vector<288x64xf32>, vector<4x64xf32> -> vector<4x64xf32>
    %c1_28 = arith.constant 1 : index
    %c1_29 = arith.constant 1 : index
    %c0_30 = arith.constant 0 : index
    %c0_31 = arith.constant 0 : index
    %26 = vector.load %arg0[%c1_28, %c1_29, %c0_30, %c0_31] : memref<4x4x4x288xf32, #tpu.memory_space<vmem>>, vector<1x1x4x288xf32>
    %27 = vector.shape_cast %26 : vector<1x1x4x288xf32> to vector<4x288xf32>
    %cst_32 = arith.constant dense<0.000000e+00> : vector<4x64xf32>
    %28 = tpu.matmul %27, %0, %cst_32 {dimension_numbers = #tpu.dot_dimension_numbers<[1], [0], [0], [1], [0, 0, 1, 1], [], []>} : vector<4x288xf32>, vector<288x64xf32>, vector<4x64xf32> -> vector<4x64xf32>
    %29 = arith.maximumf %25, %28 : vector<4x64xf32>
    %c2_33 = arith.constant 2 : index
    %c1_34 = arith.constant 1 : index
    %c0_35 = arith.constant 0 : index
    %c0_36 = arith.constant 0 : index
    %30 = vector.load %arg0[%c2_33, %c1_34, %c0_35, %c0_36] : memref<4x4x4x288xf32, #tpu.memory_space<vmem>>, vector<1x1x4x288xf32>
    %31 = vector.shape_cast %30 : vector<1x1x4x288xf32> to vector<4x288xf32>
    %cst_37 = arith.constant dense<0.000000e+00> : vector<4x64xf32>
    %32 = tpu.matmul %31, %0, %cst_37 {dimension_numbers = #tpu.dot_dimension_numbers<[1], [0], [0], [1], [0, 0, 1, 1], [], []>} : vector<4x288xf32>, vector<288x64xf32>, vector<4x64xf32> -> vector<4x64xf32>
    %33 = arith.maximumf %29, %32 : vector<4x64xf32>
    %c3_38 = arith.constant 3 : index
    %c1_39 = arith.constant 1 : index
    %c0_40 = arith.constant 0 : index
    %c0_41 = arith.constant 0 : index
    %34 = vector.load %arg0[%c3_38, %c1_39, %c0_40, %c0_41] : memref<4x4x4x288xf32, #tpu.memory_space<vmem>>, vector<1x1x4x288xf32>
    %35 = vector.shape_cast %34 : vector<1x1x4x288xf32> to vector<4x288xf32>
    %cst_42 = arith.constant dense<0.000000e+00> : vector<4x64xf32>
    %36 = tpu.matmul %35, %0, %cst_42 {dimension_numbers = #tpu.dot_dimension_numbers<[1], [0], [0], [1], [0, 0, 1, 1], [], []>} : vector<4x288xf32>, vector<288x64xf32>, vector<4x64xf32> -> vector<4x64xf32>
    %37 = arith.maximumf %33, %36 : vector<4x64xf32>
    %c0_43 = arith.constant 0 : index
    %c0_44 = arith.constant 0 : index
    %38 = vector.load %arg2[%c0_43, %c0_44] : memref<1x64xf32, #tpu.memory_space<vmem>>, vector<1x64xf32>
    %39 = vector.broadcast %38 : vector<1x64xf32> to vector<4x64xf32>
    %40 = arith.addf %37, %39 : vector<4x64xf32>
    %cst_45 = arith.constant 0.000000e+00 : f32
    %41 = vector.broadcast %cst_45 : f32 to vector<4x64xf32>
    %42 = arith.maximumf %40, %41 : vector<4x64xf32>
    %c64 = arith.constant 64 : index
    %c0_46 = arith.constant 0 : index
    %43 = vector.load %arg3[%c64, %c0_46] : memref<256x128xf32, #tpu.memory_space<vmem>>, vector<64x128xf32>
    %cst_47 = arith.constant dense<0.000000e+00> : vector<4x128xf32>
    %44 = tpu.matmul %42, %43, %cst_47 {dimension_numbers = #tpu.dot_dimension_numbers<[1], [0], [0], [1], [0, 0, 1, 1], [], []>} : vector<4x64xf32>, vector<64x128xf32>, vector<4x128xf32> -> vector<4x128xf32>
    %45 = arith.addf %22, %44 : vector<4x128xf32>
    %c0_48 = arith.constant 0 : index
    %c2_49 = arith.constant 2 : index
    %c0_50 = arith.constant 0 : index
    %c0_51 = arith.constant 0 : index
    %46 = vector.load %arg0[%c0_48, %c2_49, %c0_50, %c0_51] : memref<4x4x4x288xf32, #tpu.memory_space<vmem>>, vector<1x1x4x288xf32>
    %47 = vector.shape_cast %46 : vector<1x1x4x288xf32> to vector<4x288xf32>
    %cst_52 = arith.constant dense<0.000000e+00> : vector<4x64xf32>
    %48 = tpu.matmul %47, %0, %cst_52 {dimension_numbers = #tpu.dot_dimension_numbers<[1], [0], [0], [1], [0, 0, 1, 1], [], []>} : vector<4x288xf32>, vector<288x64xf32>, vector<4x64xf32> -> vector<4x64xf32>
    %c1_53 = arith.constant 1 : index
    %c2_54 = arith.constant 2 : index
    %c0_55 = arith.constant 0 : index
    %c0_56 = arith.constant 0 : index
    %49 = vector.load %arg0[%c1_53, %c2_54, %c0_55, %c0_56] : memref<4x4x4x288xf32, #tpu.memory_space<vmem>>, vector<1x1x4x288xf32>
    %50 = vector.shape_cast %49 : vector<1x1x4x288xf32> to vector<4x288xf32>
    %cst_57 = arith.constant dense<0.000000e+00> : vector<4x64xf32>
    %51 = tpu.matmul %50, %0, %cst_57 {dimension_numbers = #tpu.dot_dimension_numbers<[1], [0], [0], [1], [0, 0, 1, 1], [], []>} : vector<4x288xf32>, vector<288x64xf32>, vector<4x64xf32> -> vector<4x64xf32>
    %52 = arith.maximumf %48, %51 : vector<4x64xf32>
    %c2_58 = arith.constant 2 : index
    %c2_59 = arith.constant 2 : index
    %c0_60 = arith.constant 0 : index
    %c0_61 = arith.constant 0 : index
    %53 = vector.load %arg0[%c2_58, %c2_59, %c0_60, %c0_61] : memref<4x4x4x288xf32, #tpu.memory_space<vmem>>, vector<1x1x4x288xf32>
    %54 = vector.shape_cast %53 : vector<1x1x4x288xf32> to vector<4x288xf32>
    %cst_62 = arith.constant dense<0.000000e+00> : vector<4x64xf32>
    %55 = tpu.matmul %54, %0, %cst_62 {dimension_numbers = #tpu.dot_dimension_numbers<[1], [0], [0], [1], [0, 0, 1, 1], [], []>} : vector<4x288xf32>, vector<288x64xf32>, vector<4x64xf32> -> vector<4x64xf32>
    %56 = arith.maximumf %52, %55 : vector<4x64xf32>
    %c3_63 = arith.constant 3 : index
    %c2_64 = arith.constant 2 : index
    %c0_65 = arith.constant 0 : index
    %c0_66 = arith.constant 0 : index
    %57 = vector.load %arg0[%c3_63, %c2_64, %c0_65, %c0_66] : memref<4x4x4x288xf32, #tpu.memory_space<vmem>>, vector<1x1x4x288xf32>
    %58 = vector.shape_cast %57 : vector<1x1x4x288xf32> to vector<4x288xf32>
    %cst_67 = arith.constant dense<0.000000e+00> : vector<4x64xf32>
    %59 = tpu.matmul %58, %0, %cst_67 {dimension_numbers = #tpu.dot_dimension_numbers<[1], [0], [0], [1], [0, 0, 1, 1], [], []>} : vector<4x288xf32>, vector<288x64xf32>, vector<4x64xf32> -> vector<4x64xf32>
    %60 = arith.maximumf %56, %59 : vector<4x64xf32>
    %c0_68 = arith.constant 0 : index
    %c0_69 = arith.constant 0 : index
    %61 = vector.load %arg2[%c0_68, %c0_69] : memref<1x64xf32, #tpu.memory_space<vmem>>, vector<1x64xf32>
    %62 = vector.broadcast %61 : vector<1x64xf32> to vector<4x64xf32>
    %63 = arith.addf %60, %62 : vector<4x64xf32>
    %cst_70 = arith.constant 0.000000e+00 : f32
    %64 = vector.broadcast %cst_70 : f32 to vector<4x64xf32>
    %65 = arith.maximumf %63, %64 : vector<4x64xf32>
    %c128 = arith.constant 128 : index
    %c0_71 = arith.constant 0 : index
    %66 = vector.load %arg3[%c128, %c0_71] : memref<256x128xf32, #tpu.memory_space<vmem>>, vector<64x128xf32>
    %cst_72 = arith.constant dense<0.000000e+00> : vector<4x128xf32>
    %67 = tpu.matmul %65, %66, %cst_72 {dimension_numbers = #tpu.dot_dimension_numbers<[1], [0], [0], [1], [0, 0, 1, 1], [], []>} : vector<4x64xf32>, vector<64x128xf32>, vector<4x128xf32> -> vector<4x128xf32>
    %68 = arith.addf %45, %67 : vector<4x128xf32>
    %c0_73 = arith.constant 0 : index
    %c3_74 = arith.constant 3 : index
    %c0_75 = arith.constant 0 : index
    %c0_76 = arith.constant 0 : index
    %69 = vector.load %arg0[%c0_73, %c3_74, %c0_75, %c0_76] : memref<4x4x4x288xf32, #tpu.memory_space<vmem>>, vector<1x1x4x288xf32>
    %70 = vector.shape_cast %69 : vector<1x1x4x288xf32> to vector<4x288xf32>
    %cst_77 = arith.constant dense<0.000000e+00> : vector<4x64xf32>
    %71 = tpu.matmul %70, %0, %cst_77 {dimension_numbers = #tpu.dot_dimension_numbers<[1], [0], [0], [1], [0, 0, 1, 1], [], []>} : vector<4x288xf32>, vector<288x64xf32>, vector<4x64xf32> -> vector<4x64xf32>
    %c1_78 = arith.constant 1 : index
    %c3_79 = arith.constant 3 : index
    %c0_80 = arith.constant 0 : index
    %c0_81 = arith.constant 0 : index
    %72 = vector.load %arg0[%c1_78, %c3_79, %c0_80, %c0_81] : memref<4x4x4x288xf32, #tpu.memory_space<vmem>>, vector<1x1x4x288xf32>
    %73 = vector.shape_cast %72 : vector<1x1x4x288xf32> to vector<4x288xf32>
    %cst_82 = arith.constant dense<0.000000e+00> : vector<4x64xf32>
    %74 = tpu.matmul %73, %0, %cst_82 {dimension_numbers = #tpu.dot_dimension_numbers<[1], [0], [0], [1], [0, 0, 1, 1], [], []>} : vector<4x288xf32>, vector<288x64xf32>, vector<4x64xf32> -> vector<4x64xf32>
    %75 = arith.maximumf %71, %74 : vector<4x64xf32>
    %c2_83 = arith.constant 2 : index
    %c3_84 = arith.constant 3 : index
    %c0_85 = arith.constant 0 : index
    %c0_86 = arith.constant 0 : index
    %76 = vector.load %arg0[%c2_83, %c3_84, %c0_85, %c0_86] : memref<4x4x4x288xf32, #tpu.memory_space<vmem>>, vector<1x1x4x288xf32>
    %77 = vector.shape_cast %76 : vector<1x1x4x288xf32> to vector<4x288xf32>
    %cst_87 = arith.constant dense<0.000000e+00> : vector<4x64xf32>
    %78 = tpu.matmul %77, %0, %cst_87 {dimension_numbers = #tpu.dot_dimension_numbers<[1], [0], [0], [1], [0, 0, 1, 1], [], []>} : vector<4x288xf32>, vector<288x64xf32>, vector<4x64xf32> -> vector<4x64xf32>
    %79 = arith.maximumf %75, %78 : vector<4x64xf32>
    %c3_88 = arith.constant 3 : index
    %c3_89 = arith.constant 3 : index
    %c0_90 = arith.constant 0 : index
    %c0_91 = arith.constant 0 : index
    %80 = vector.load %arg0[%c3_88, %c3_89, %c0_90, %c0_91] : memref<4x4x4x288xf32, #tpu.memory_space<vmem>>, vector<1x1x4x288xf32>
    %81 = vector.shape_cast %80 : vector<1x1x4x288xf32> to vector<4x288xf32>
    %cst_92 = arith.constant dense<0.000000e+00> : vector<4x64xf32>
    %82 = tpu.matmul %81, %0, %cst_92 {dimension_numbers = #tpu.dot_dimension_numbers<[1], [0], [0], [1], [0, 0, 1, 1], [], []>} : vector<4x288xf32>, vector<288x64xf32>, vector<4x64xf32> -> vector<4x64xf32>
    %83 = arith.maximumf %79, %82 : vector<4x64xf32>
    %c0_93 = arith.constant 0 : index
    %c0_94 = arith.constant 0 : index
    %84 = vector.load %arg2[%c0_93, %c0_94] : memref<1x64xf32, #tpu.memory_space<vmem>>, vector<1x64xf32>
    %85 = vector.broadcast %84 : vector<1x64xf32> to vector<4x64xf32>
    %86 = arith.addf %83, %85 : vector<4x64xf32>
    %cst_95 = arith.constant 0.000000e+00 : f32
    %87 = vector.broadcast %cst_95 : f32 to vector<4x64xf32>
    %88 = arith.maximumf %86, %87 : vector<4x64xf32>
    %c192 = arith.constant 192 : index
    %c0_96 = arith.constant 0 : index
    %89 = vector.load %arg3[%c192, %c0_96] : memref<256x128xf32, #tpu.memory_space<vmem>>, vector<64x128xf32>
    %cst_97 = arith.constant dense<0.000000e+00> : vector<4x128xf32>
    %90 = tpu.matmul %88, %89, %cst_97 {dimension_numbers = #tpu.dot_dimension_numbers<[1], [0], [0], [1], [0, 0, 1, 1], [], []>} : vector<4x64xf32>, vector<64x128xf32>, vector<4x128xf32> -> vector<4x128xf32>
    %91 = arith.addf %68, %90 : vector<4x128xf32>
    %c0_98 = arith.constant 0 : index
    %c0_99 = arith.constant 0 : index
    %92 = vector.load %arg4[%c0_98, %c0_99] : memref<1x128xf32, #tpu.memory_space<vmem>>, vector<1x128xf32>
    %93 = vector.broadcast %92 : vector<1x128xf32> to vector<4x128xf32>
    %94 = arith.addf %91, %93 : vector<4x128xf32>
    %cst_100 = arith.constant 0.000000e+00 : f32
    %95 = vector.broadcast %cst_100 : f32 to vector<4x128xf32>
    %96 = arith.maximumf %94, %95 : vector<4x128xf32>
    %c0_101 = arith.constant 0 : index
    %c0_102 = arith.constant 0 : index
    %97 = vector.load %arg5[%c0_101, %c0_102] : memref<128x128xf32, #tpu.memory_space<vmem>>, vector<128x128xf32>
    %cst_103 = arith.constant dense<0.000000e+00> : vector<4x128xf32>
    %98 = tpu.matmul %96, %97, %cst_103 {dimension_numbers = #tpu.dot_dimension_numbers<[1], [0], [0], [1], [0, 0, 1, 1], [], []>} : vector<4x128xf32>, vector<128x128xf32>, vector<4x128xf32> -> vector<4x128xf32>
    %c0_104 = arith.constant 0 : index
    %c0_105 = arith.constant 0 : index
    %99 = vector.load %arg6[%c0_104, %c0_105] : memref<1x128xf32, #tpu.memory_space<vmem>>, vector<1x128xf32>
    %100 = vector.broadcast %99 : vector<1x128xf32> to vector<4x128xf32>
    %101 = arith.addf %98, %100 : vector<4x128xf32>
    %c0_106 = arith.constant 0 : index
    %c0_107 = arith.constant 0 : index
    %102 = vector.load %arg7[%c0_106, %c0_107] : memref<4x128xf32, #tpu.memory_space<vmem>>, vector<4x128xf32>
    tpu.vector_store %arg7[%c0_106, %c0_107], %101 {strides = array<i32>} : memref<4x128xf32, #tpu.memory_space<vmem>>, vector<4x128xf32>,
    return
  }
}

</mosaic_0001>

<bundles_post_ra>
// kernel: forward.2
= control target key start
LH: loop header
LB: loop body
LE: loop exit
PB: predicated region body
PF: predicated region fallthrough
CT: control target
= control target key end

     0   :  { %vm35_vm0 = vcmask 1040384   ;;  %vm573_vm1 = vmmov 1   ;;  %v574_v3 = vmov 0.0   ;;  %v575_v8 = vmov 0   ;;  %s748_s0 = inlined_call_operand.vmem [shape: f32[4,9,144], index: 0, kind: input, shape index: {}]   ;;  %s749_s1 = inlined_call_operand.vmem [shape: f32[32,9], index: 1, kind: input, shape index: {}]   ;;  %s750_s2 = inlined_call_operand.vmem [shape: f32[32,1], index: 2, kind: input, shape index: {}]   ;;  %s751_s3 = inlined_call_operand.vmem [shape: f32[32,144], index: 3, kind: output, shape index: {}]  }
   0x1   :  { %v19_v0 = vld [vmem:[%s748_s0 + $0x8] sm:$0xff]  ;;  %v21_v1 = vld [vmem:[%s748_s0 + $0x18] sm:$0x1]  ;;  %vm602_vm2 = vmpackc.low %vm35_vm0, %vm573_vm1  ;;  %106 = vmatprep.mubr.f32.mxu0 %v574_v3  ;;  %206 = vmatprep.mubr.f32.mxu1 %v574_v3  ;;  %vm22_vm3 = vcmask 72704   ;;  %vm496_vm4 = vcmask 130048  }
   0x2   :  { %v544_v4 = vpack.c.bf16 %v21_v1, %v19_v0  ;;  %v515_v5 = vld [vmem:[%s748_s0 + $0x28] sm:$0xff]  ;;  %v517_v6 = vld [vmem:[%s748_s0 + $0x38] sm:$0x1]  ;;  %v18_v7 = vld [vmem:[%s748_s0] sm:$0xff]  ;;  %571 = vset.pattern.permute.xlu0 %v575_v8  ;;  %572 = vset.pattern.permute.xlu1 %v575_v8 }
   0x3   :  { %v550_v9 = vpack.c.bf16 %v517_v6, %v515_v5  ;;  %v20_v10 = vld [vmem:[%s748_s0 + $0x10] sm:$0x1]  ;;  %v514_v11 = vld [vmem:[%s748_s0 + $0x20] sm:$0xff]  ;;  %v525_v16 = vld [vmem:[%s748_s0 + $0x48] sm:$0xff] }
   0x4   :  { %v516_v12 = vld [vmem:[%s748_s0 + $0x30] sm:$0x1]  ;;  %546 = vmatprep.subr.msk.bf16.mxu0 %vm602_vm2, %v544_v4  ;;  %v547_v13 = vpack.c.bf16 %v20_v10, %v18_v7  ;;  %v14_v15 = vld [vmem:[%s749_s1] sm:$0xff]  ;;  %v527_v17 = vld [vmem:[%s748_s0 + $0x58] sm:$0x1] }
   0x5   :  { %v553_v14 = vpack.c.bf16 %v516_v12, %v514_v11  ;;  %552 = vmatprep.subr.msk.bf16.mxu1 %vm602_vm2, %v550_v9  ;;  %v556_v18 = vpack.c.bf16 %v527_v17, %v525_v16  ;;  %v524_v19 = vld [vmem:[%s748_s0 + $0x40] sm:$0xff]  ;;  %v526_v20 = vld [vmem:[%s748_s0 + $0x50] sm:$0x1]  ;;  %v535_v21 = vld [vmem:[%s748_s0 + $0x68] sm:$0xff] }
   0x6   :  { %549 = vmatpush1.bf16.msk.msra.mxu0 %vm602_vm2, %v547_v13  ;;  %v559_v22 = vpack.c.bf16 %v526_v20, %v524_v19  ;;  %v537_v23 = vld [vmem:[%s748_s0 + $0x78] sm:$0x1]  ;;  %v534_v24 = vld [vmem:[%s748_s0 + $0x60] sm:$0xff]  ;;  %v536_v25 = vld [vmem:[%s748_s0 + $0x70] sm:$0x1] }
   0x7   :  { %555 = vmatpush1.bf16.msk.msra.mxu1 %vm602_vm2, %v553_v14  ;;  %558 = vmatprep.subr.msk.bf16.mxu0 %vm602_vm2, %v556_v18  ;;  %v562_v26 = vpack.c.bf16 %v537_v23, %v535_v21  ;;  %v565_v27 = vpack.c.bf16 %v536_v25, %v534_v24  ;;  %v455_v28 = vld [vmem:[%s750_s2] sm:$0xff]  ;;  %v15_v29 = vld [vmem:[%s749_s1 + $0x8] sm:$0xff]  ;;  %v457_v30 = vld [vmem:[%s750_s2 + $0x10] sm:$0xff] }
   0x8   :  { %461 = vperm.xlu0 %571, %v455_v28   ;;  %v456_v31 = vld [vmem:[%s750_s2 + $0x8] sm:$0xff]  ;;  %v16_v32 = vld [vmem:[%s749_s1 + $0x10] sm:$0xff]  ;;  %471 = vperm.xlu1 %572, %v457_v30   ;;  %v458_v33 = vld [vmem:[%s750_s2 + $0x18] sm:$0xff] }
   0x9   :  { %510 = vmatmul.mubr.msk.f32.vlgmr.msra.gmra.mrb[0].mxu0 %vm22_vm3, %v14_v15  ;;  %564 = vmatprep.subr.msk.bf16.mxu1 %vm602_vm2, %v562_v26  ;;  %v17_v34 = vld [vmem:[%s749_s1 + $0x18] sm:$0xff] }
   0xa   :  { %520 = vmatmul.mubr.msk.f32.vlgmr.msra.gmra.mrb[0].mxu1 %vm22_vm3, %v14_v15  ;;  %561 = vmatpush1.bf16.msk.msra.mxu0 %vm602_vm2, %v559_v22 }
   0xb   :  { %112 = vmatprep.mubr.f32.mxu0 %v574_v3  ;;  %212 = vmatprep.mubr.f32.mxu1 %v574_v3 }
   0xc   :  { %567 = vmatpush1.bf16.msk.msra.mxu1 %vm602_vm2, %v565_v27  ;;  %466 = vperm.xlu0 %571, %v456_v31  }
   0xd   :  { %511 = vmatmul.mubr.msk.f32.gmra.mrb[2].mxu0 %vm22_vm3, %v15_v29  ;;  %476 = vperm.xlu1 %572, %v458_v33  }
   0xe   :  { %521 = vmatmul.mubr.msk.f32.gmra.mrb[2].mxu1 %vm22_vm3, %v15_v29  ;;  %118 = vmatprep.mubr.f32.mxu0 %v574_v3 }
   0xf   :  { %218 = vmatprep.mubr.f32.mxu1 %v574_v3 }
  0x11   :  { %512 = vmatmul.mubr.msk.f32.gmra.mrb[4].mxu0 %vm22_vm3, %v16_v32 }
  0x12   :  { %522 = vmatmul.mubr.msk.f32.gmra.mrb[4].mxu1 %vm22_vm3, %v16_v32  ;;  %124 = vmatprep.mubr.f32.mxu0 %v574_v3 }
  0x13   :  { %224 = vmatprep.mubr.f32.mxu1 %v574_v3 }
  0x15   :  { %513 = vmatmul.mubr.msk.f32.gmra.mrb[6].mxu0 %vm22_vm3, %v17_v34 }
  0x16   :  { %523 = vmatmul.mubr.msk.f32.gmra.mrb[6].mxu1 %vm22_vm3, %v17_v34  ;;  %314 = vmatprep.mubr.f32.mxu0 %v574_v3 }
  0x17   :  { %422 = vmatprep.mubr.f32.mxu1 %v574_v3 }
  0x19   :  { %530 = vmatmul.mubr.msk.f32.vlgmr.msra.gmra.mrb[8].mxu0 %vm22_vm3, %v14_v15 }
  0x1a   :  { %540 = vmatmul.mubr.msk.f32.vlgmr.msra.gmra.mrb[8].mxu1 %vm22_vm3, %v14_v15  ;;  %320 = vmatprep.mubr.f32.mxu0 %v574_v3 }
  0x1b   :  { %428 = vmatprep.mubr.f32.mxu1 %v574_v3 }
  0x1d   :  { %531 = vmatmul.mubr.msk.f32.gmra.mrb[10].mxu0 %vm22_vm3, %v15_v29 }
  0x1e   :  { %541 = vmatmul.mubr.msk.f32.gmra.mrb[10].mxu1 %vm22_vm3, %v15_v29  ;;  %326 = vmatprep.mubr.f32.mxu0 %v574_v3 }
  0x1f   :  { %434 = vmatprep.mubr.f32.mxu1 %v574_v3 }
  0x21   :  { %532 = vmatmul.mubr.msk.f32.gmra.mrb[12].mxu0 %vm22_vm3, %v16_v32 }
  0x22   :  { %542 = vmatmul.mubr.msk.f32.gmra.mrb[12].mxu1 %vm22_vm3, %v16_v32  ;;  %332 = vmatprep.mubr.f32.mxu0 %v574_v3 }
  0x23   :  { %440 = vmatprep.mubr.f32.mxu1 %v574_v3 }
  0x25   :  { %533 = vmatmul.mubr.msk.f32.gmra.mrb[14].mxu0 %vm22_vm3, %v17_v34 }
  0x26   :  { %543 = vmatmul.mubr.msk.f32.gmra.mrb[14].mxu1 %vm22_vm3, %v17_v34 }
  0x87   :  { %v462_v59 = vpop.permute.xlu0 %461  ;;  %v472_v25 = vpop.permute.xlu1 %471 }
  0x8b   :  { %v467_v12 = vpop.permute.xlu0 %466 }
  0xdc   :  { %v108_v35 = vpop.f32.mrb[0].mxu0 }
  0xdd   :  { %v208_v36 = vpop.f32.mrb[0].mxu1  ;;  %v110_v38 = vpop.f32.mrb[1].mxu0 }
  0xde   :  { %v231_v37 = vmax.f32 %v108_v35, %v208_v36  ;;  %v210_v39 = vpop.f32.mrb[1].mxu1 }
  0xdf   :  { %v232_v40 = vmax.f32 %v110_v38, %v210_v39 }
  0xe0   :  { %v114_v41 = vpop.f32.mrb[2].mxu0 }
  0xe1   :  { %v214_v42 = vpop.f32.mrb[2].mxu1  ;;  %v116_v44 = vpop.f32.mrb[3].mxu0 }
  0xe2   :  { %v233_v43 = vmax.f32 %v114_v41, %v214_v42  ;;  %v216_v45 = vpop.f32.mrb[3].mxu1  ;;  %v477_v41 = vpop.permute.xlu1 %476 }
  0xe3   :  { %v234_v46 = vmax.f32 %v116_v44, %v216_v45 }
  0xe4   :  { %v120_v47 = vpop.f32.mrb[4].mxu0 }
  0xe5   :  { %v220_v48 = vpop.f32.mrb[4].mxu1  ;;  %v122_v50 = vpop.f32.mrb[5].mxu0 }
  0xe6   :  { %v235_v49 = vmax.f32 %v120_v47, %v220_v48  ;;  %v222_v51 = vpop.f32.mrb[5].mxu1 }
  0xe7   :  { %v236_v52 = vmax.f32 %v122_v50, %v222_v51 }
  0xe8   :  { %v126_v53 = vpop.f32.mrb[6].mxu0 }
  0xe9   :  { %v226_v54 = vpop.f32.mrb[6].mxu1  ;;  %v128_v56 = vpop.f32.mrb[7].mxu0 }
  0xea   :  { %v237_v55 = vmax.f32 %v126_v53, %v226_v54  ;;  %v228_v57 = vpop.f32.mrb[7].mxu1 }
  0xeb   :  { %v238_v58 = vmax.f32 %v128_v56, %v228_v57 }
  0xec   :  { %v316_v60 = vpop.f32.mrb[8].mxu0 }
  0xed   :  { %v424_v61 = vpop.f32.mrb[8].mxu1  ;;  %v339_v62 = vmax.f32 %v231_v37, %v316_v60  ;;  %v318_v63 = vpop.f32.mrb[9].mxu0 }
  0xee   :  { %v426_v0 = vpop.f32.mrb[9].mxu1  ;;  %v340_v1 = vmax.f32 %v232_v40, %v318_v63 }
  0xef   :  { %v447_v2 = vmax.f32 %v339_v62, %v424_v61 }
  0xf0   :  { %v448_v3 = vmax.f32 %v340_v1, %v426_v0  ;;  %v322_v4 = vpop.f32.mrb[10].mxu0 }
  0xf1   :  { %v430_v5 = vpop.f32.mrb[10].mxu1  ;;  %v479_v6 = vadd.f32 %v462_v59, %v447_v2  ;;  %v341_v7 = vmax.f32 %v233_v43, %v322_v4  ;;  %v324_v8 = vpop.f32.mrb[11].mxu0 }
  0xf2   :  { %v432_v9 = vpop.f32.mrb[11].mxu1  ;;  %v480_v10 = vadd.f32 %v462_v59, %v448_v3  ;;  %v342_v11 = vmax.f32 %v234_v46, %v324_v8 }
  0xf3   :  { %v487_v13 = vmax.f32 %v479_v6, 0.0  ;;  %v449_v14 = vmax.f32 %v341_v7, %v430_v5 }
  0xf4   :  { %v488_v15 = vmax.f32 %v480_v10, 0.0  ;;  %v450_v16 = vmax.f32 %v342_v11, %v432_v9  ;;  %v328_v17 = vpop.f32.mrb[12].mxu0 }
  0xf5   :  { %v436_v18 = vpop.f32.mrb[12].mxu1  ;;  %495 = vst [vmem:[%s751_s3] sm:$0xff] %v487_v13  ;;  %v481_v19 = vadd.f32 %v467_v12, %v449_v14  ;;  %v343_v20 = vmax.f32 %v235_v49, %v328_v17  ;;  %v330_v21 = vpop.f32.mrb[13].mxu0 }
  0xf6   :  { %v438_v22 = vpop.f32.mrb[13].mxu1  ;;  %497 = vst.msk [vmem:[%s751_s3 + $0x8] sm:$0xff] %vm496_vm4, %v488_v15  ;;  %v482_v23 = vadd.f32 %v467_v12, %v450_v16  ;;  %v344_v24 = vmax.f32 %v236_v52, %v330_v21 }
  0xf7   :  { %v489_v26 = vmax.f32 %v481_v19, 0.0  ;;  %v451_v27 = vmax.f32 %v343_v20, %v436_v18 }
  0xf8   :  { %v490_v28 = vmax.f32 %v482_v23, 0.0  ;;  %v452_v29 = vmax.f32 %v344_v24, %v438_v22  ;;  %v334_v30 = vpop.f32.mrb[14].mxu0 }
  0xf9   :  { %v442_v31 = vpop.f32.mrb[14].mxu1  ;;  %498 = vst [vmem:[%s751_s3 + $0x10] sm:$0xff] %v489_v26  ;;  %v483_v32 = vadd.f32 %v472_v25, %v451_v27  ;;  %v345_v33 = vmax.f32 %v237_v55, %v334_v30  ;;  %v336_v34 = vpop.f32.mrb[15].mxu0 }
  0xfa   :  { %v444_v35 = vpop.f32.mrb[15].mxu1  ;;  %499 = vst.msk [vmem:[%s751_s3 + $0x18] sm:$0xff] %vm496_vm4, %v490_v28  ;;  %v484_v36 = vadd.f32 %v472_v25, %v452_v29  ;;  %v346_v37 = vmax.f32 %v238_v58, %v336_v34 }
  0xfb   :  { %v491_v38 = vmax.f32 %v483_v32, 0.0  ;;  %v453_v39 = vmax.f32 %v345_v33, %v442_v31 }
  0xfc   :  { %v492_v40 = vmax.f32 %v484_v36, 0.0  ;;  %v454_v42 = vmax.f32 %v346_v37, %v444_v35 }
  0xfd   :  { %500 = vst [vmem:[%s751_s3 + $0x20] sm:$0xff] %v491_v38  ;;  %v485_v43 = vadd.f32 %v477_v41, %v453_v39 }
  0xfe   :  { %501 = vst.msk [vmem:[%s751_s3 + $0x28] sm:$0xff] %vm496_vm4, %v492_v40  ;;  %v486_v44 = vadd.f32 %v477_v41, %v454_v42 }
  0xff   :  { %v493_v45 = vmax.f32 %v485_v43, 0.0 }
 0x100   :  { %v494_v46 = vmax.f32 %v486_v44, 0.0 }
 0x101   :  { %502 = vst [vmem:[%s751_s3 + $0x30] sm:$0xff] %v493_v45 }
 0x102   :  { %503 = vst.msk [vmem:[%s751_s3 + $0x38] sm:$0xff] %vm496_vm4, %v494_v46 }

// kernel: forward.3
= control target key start
LH: loop header
LB: loop body
LE: loop exit
PB: predicated region body
PF: predicated region fallthrough
CT: control target
= control target key end

     0   :  { %v4675_v3 = vmov 0.0|0.0   ;;  %vm4676_vm0 = vmmov 0   ;;  %v4677_v8 = vmov 0.0   ;;  %vm69_vm1 = vcmask 261120   ;;  %s5571_s0 = inlined_call_operand.vmem [shape: f32[4,4,4,288], index: 0, kind: input, shape index: {}]   ;;  %s5572_s1 = inlined_call_operand.vmem [shape: f32[288,64], index: 1, kind: input, shape index: {}]   ;;  %s5573_s2 = inlined_call_operand.vmem [shape: f32[1,64], index: 2, kind: input, shape index: {}]   ;;  %s5574_s3 = inlined_call_operand.vmem [shape: f32[256,128], index: 3, kind: input, shape index: {}]   ;;  %s5575_s4 = inlined_call_operand.vmem [shape: f32[1,128], index: 4, kind: input, shape index: {}]   ;;  %s5576_s5 = inlined_call_operand.vmem [shape: f32[128,128], index: 5, kind: input, shape index: {}]   ;;  %s5577_s6 = inlined_call_operand.vmem [shape: f32[1,128], index: 6, kind: input, shape index: {}]   ;;  %s5578_s7 = inlined_call_operand.hbm [shape: f32[4,128], index: 7, kind: output, shape index: {}]  }
   0x1   :  { %v43_v0 = vld [vmem:[%s5572_s1 + $0x80] sm:$0xff]  ;;  %v44_v1 = vld [vmem:[%s5572_s1 + $0x88] sm:$0xff]  ;;  %3983 = vmatprep.subr.bf16.mxu1 %v4675_v3  ;;  %3672 = vmatprep.mubr.msk.f32.mxu1 %vm4676_vm0, %v4677_v8  ;;  %v45_v11 = vld [vmem:[%s5572_s1 + $0x90] sm:$0xff] }
   0x2   :  { %v59_v2 = vld [vmem:[%s5572_s1 + $0x100] sm:$0xff]  ;;  %v4729_v4 = vpack.c.bf16 %v44_v1, %v43_v0  ;;  %v60_v5 = vld [vmem:[%s5572_s1 + $0x108] sm:$0xff]  ;;  %v46_v12 = vld [vmem:[%s5572_s1 + $0x98] sm:$0xff] }
   0x3   :  { %v27_v6 = vld [vmem:[%s5572_s1] sm:$0xff]  ;;  %v28_v7 = vld [vmem:[%s5572_s1 + $0x8] sm:$0xff]  ;;  %v4742_v9 = vpack.c.bf16 %v60_v5, %v59_v2  ;;  %v61_v13 = vld [vmem:[%s5572_s1 + $0x110] sm:$0xff]  ;;  %v4756_v14 = vpack.c.bf16 %v46_v12, %v45_v11 }
   0x4   :  { %v4744_v10 = vpack.c.bf16 %v28_v7, %v27_v6  ;;  %3952 = vmatprep.subr.bf16.mxu0 %v4729_v4  ;;  %v62_v15 = vld [vmem:[%s5572_s1 + $0x118] sm:$0xff]  ;;  %v29_v16 = vld [vmem:[%s5572_s1 + $0x10] sm:$0xff]  ;;  %v47_v20 = vld [vmem:[%s5572_s1 + $0xa0] sm:$0xff] }
   0x5   :  { %v30_v17 = vld [vmem:[%s5572_s1 + $0x18] sm:$0xff]  ;;  %3985 = vmatpush3.bf16.msra.mxu1 %v4742_v9  ;;  %v4769_v18 = vpack.c.bf16 %v62_v15, %v61_v13  ;;  %v48_v21 = vld [vmem:[%s5572_s1 + $0xa8] sm:$0xff]  ;;  %v31_v23 = vld [vmem:[%s5572_s1 + $0x20] sm:$0xff] }
   0x6   :  { %3954 = vmatpush3.bf16.msra.mxu0 %v4744_v10  ;;  %v4771_v19 = vpack.c.bf16 %v30_v17, %v29_v16  ;;  %3986 = vmatprep.subr.bf16.mxu1 %v4675_v3  ;;  %v4781_v22 = vpack.c.bf16 %v48_v21, %v47_v20  ;;  %v32_v24 = vld [vmem:[%s5572_s1 + $0x28] sm:$0xff]  ;;  %v49_v25 = vld [vmem:[%s5572_s1 + $0xb0] sm:$0xff]  ;;  %v50_v26 = vld [vmem:[%s5572_s1 + $0xb8] sm:$0xff] }
   0x7   :  { %3956 = vmatprep.subr.bf16.mxu0 %v4756_v14  ;;  %v64_v27 = vld [vmem:[%s5571_s0 + $0x8] sm:$0xf]  ;;  %v4800_v28 = vpack.c.bf16 %v32_v24, %v31_v23  ;;  %v4804_v29 = vpack.c.bf16 %v50_v26, %v49_v25  ;;  %v33_v30 = vld [vmem:[%s5572_s1 + $0x30] sm:$0xff]  ;;  %v34_v31 = vld [vmem:[%s5572_s1 + $0x38] sm:$0xff] }
   0x8   :  { %v51_v32 = vld [vmem:[%s5572_s1 + $0xc0] sm:$0xff]  ;;  %v52_v33 = vld [vmem:[%s5572_s1 + $0xc8] sm:$0xff]  ;;  %v4821_v34 = vpack.c.bf16 %v34_v31, %v33_v30  ;;  %v4829_v36 = vld [vmem:[%s5571_s0 + $0x30] sm:$0xff] }
   0x9   :  { %3988 = vmatpush3.bf16.msra.mxu1 %v4769_v18  ;;  %v63_v35 = vld [vmem:[%s5571_s0] sm:$0xff]  ;;  %v4833_v37 = vpack.c.bf16 %v52_v33, %v51_v32  ;;  %v36_v39 = vld [vmem:[%s5572_s1 + $0x48] sm:$0xff]  ;;  %v217_v41 = vcombine.high %v4829_v36, %v4829_v36  ;;  %v53_v42 = vld [vmem:[%s5572_s1 + $0xd0] sm:$0xff] }
   0xa   :  { %3958 = vmatpush3.bf16.msra.mxu0 %v4771_v19  ;;  %3990 = vmatprep.subr.bf16.mxu1 %v4729_v4  ;;  %v35_v38 = vld [vmem:[%s5572_s1 + $0x40] sm:$0xff]  ;;  %v67_v40 = vcombine.high %v63_v35, %v63_v35  ;;  %v54_v43 = vld [vmem:[%s5572_s1 + $0xd8] sm:$0xff] }
   0xb   :  { %3960 = vmatprep.subr.bf16.mxu0 %v4781_v22  ;;  %v4851_v44 = vpack.c.bf16 %v36_v39, %v35_v38 }
   0xc   :  { %3673 = vmatmul.mubr.msk.f32.vlgmr.msra.gmra.mrb[0].mxu1 %vm69_vm1, %v64_v27  ;;  %136 = vmatprep.mubr.f32.mxu0 %v67_v40 }
   0xd   :  { %3992 = vmatpush3.bf16.msra.mxu1 %v4744_v10  ;;  %285 = vmatprep.mubr.f32.mxu1 %v217_v41 }
   0xe   :  { %3962 = vmatpush3.bf16.msra.mxu0 %v4800_v28  ;;  %3994 = vmatprep.subr.bf16.mxu1 %v4756_v14 }
   0xf   :  { %3964 = vmatprep.subr.bf16.mxu0 %v4804_v29 }
  0x11   :  { %3996 = vmatpush3.bf16.msra.mxu1 %v4771_v19 }
  0x12   :  { %3966 = vmatpush3.bf16.msra.mxu0 %v4821_v34 }
  0x13   :  { %12 = vsyncpa [#allocation3], 0  ;;  %3998 = vmatprep.subr.bf16.mxu1 %v4781_v22  ;;  %3968 = vmatprep.subr.bf16.mxu0 %v4833_v37  ;;  %v4855_v45 = vpack.c.bf16 %v54_v43, %v53_v42  ;;  %v37_v46 = vld [vmem:[%s5572_s1 + $0x50] sm:$0xff]  ;;  %v38_v47 = vld [vmem:[%s5572_s1 + $0x58] sm:$0xff]  ;;  %vm1288_vm2 = vcmask 523264   ;;  %s4678_s17 = smov [#allocation2]  }
  0x14   :  { %v55_v48 = vld [vmem:[%s5572_s1 + $0xe0] sm:$0xff]  ;;  %v56_v49 = vld [vmem:[%s5572_s1 + $0xe8] sm:$0xff]  ;;  %v4871_v50 = vpack.c.bf16 %v38_v47, %v37_v46  ;;  %v57_v54 = vld [vmem:[%s5572_s1 + $0xf0] sm:$0xff]  ;;  %s2910_s18 = sshll.u32 %s4678_s17, 4  ;;  %s2911_s18 = int_to_ptr.vmem [resolvable:$true] %s2910_s18 }
  0x15   :  { %4000 = vmatpush3.bf16.msra.mxu1 %v4800_v28  ;;  %v4875_v51 = vpack.c.bf16 %v56_v49, %v55_v48  ;;  %v39_v52 = vld [vmem:[%s5572_s1 + $0x60] sm:$0xff]  ;;  %v40_v53 = vld [vmem:[%s5572_s1 + $0x68] sm:$0xff]  ;;  %v58_v55 = vld [vmem:[%s5572_s1 + $0xf8] sm:$0xff]  ;;  %p4656_p1 = scmp.lt.s32.totalorder %s2911_s18, %s2911_s18 }
  0x16   :  { %3970 = vmatpush3.bf16.msra.mxu0 %v4851_v44  ;;  %4002 = vmatprep.subr.bf16.mxu1 %v4804_v29  ;;  %v4891_v56 = vpack.c.bf16 %v40_v53, %v39_v52  ;;  %v4895_v57 = vpack.c.bf16 %v58_v55, %v57_v54  ;;  %v41_v58 = vld [vmem:[%s5572_s1 + $0x70] sm:$0xff]  ;;  %v42_v59 = vld [vmem:[%s5572_s1 + $0x78] sm:$0xff]  ;;  %v2922_v61 = vld [vmem:[%s5571_s0 + $0x60] sm:$0xff] }
  0x17   :  { %3972 = vmatprep.subr.bf16.mxu0 %v4855_v45  ;;  %v4905_v60 = vpack.c.bf16 %v42_v59, %v41_v58  ;;  %v2920_v62 = vld [vmem:[%s5571_s0 + $0x38] sm:$0xf]  ;;  %v367_v63 = vcombine.high %v2922_v61, %v2922_v61  ;;  %v2925_v0 = vld [vmem:[%s5571_s0 + $0x90] sm:$0xff]  ;;  %v2923_v1 = vld [vmem:[%s5571_s0 + $0x68] sm:$0xf] }
  0x18   :  { %v517_v2 = vcombine.high %v2925_v0, %v2925_v0  ;;  %v2929_v5 = vld [vmem:[%s5571_s0 + $0xc] sm:$0xff]  ;;  %v2926_v6 = vld [vmem:[%s5571_s0 + $0x98] sm:$0xf]  ;;  %v2932_v11 = vld [vmem:[%s5571_s0 + $0x3c] sm:$0xff] }
  0x19   :  { %4004 = vmatpush3.bf16.msra.mxu1 %v4821_v34  ;;  %v684_v7 = vcombine.high %v2929_v5, %v2929_v5  ;;  %v2930_v12 = vld [vmem:[%s5571_s0 + $0x14] sm:$0xf]  ;;  %v833_v13 = vcombine.high %v2932_v11, %v2932_v11  ;;  %v2935_v15 = vld [vmem:[%s5571_s0 + $0x6c] sm:$0xff]  ;;  %v2933_v16 = vld [vmem:[%s5571_s0 + $0x44] sm:$0xf] }
  0x1a   :  { %3974 = vmatpush3.bf16.msra.mxu0 %v4871_v50  ;;  %4006 = vmatprep.subr.bf16.mxu1 %v4833_v37  ;;  %v983_v17 = vcombine.high %v2935_v15, %v2935_v15  ;;  %v2938_v20 = vld [vmem:[%s5571_s0 + $0x9c] sm:$0xff]  ;;  %v2936_v21 = vld [vmem:[%s5571_s0 + $0x74] sm:$0xf]  ;;  %v2939_v24 = vld [vmem:[%s5571_s0 + $0xa4] sm:$0xf] }
  0x1b   :  { %3976 = vmatprep.subr.bf16.mxu0 %v4875_v51  ;;  %v1133_v23 = vcombine.high %v2938_v20, %v2938_v20  ;;  %v1280_v27 = vld [vmem:[%s5574_s3 + $0x40] sm:$0xff]  ;;  %v1281_v30 = vld [vmem:[%s5574_s3 + $0x48] sm:$0xff]  ;;  %v1282_v32 = vld [vmem:[%s5574_s3 + $0x50] sm:$0xff] }
  0x1c   :  { %v4256_v31 = vpack.c.bf16 %v1281_v30, %v1280_v27  ;;  %v1283_v33 = vld [vmem:[%s5574_s3 + $0x58] sm:$0xff]  ;;  %v1284_v39 = vld [vmem:[%s5574_s3 + $0x60] sm:$0xff]  ;;  %v1285_v40 = vld [vmem:[%s5574_s3 + $0x68] sm:$0xff] }
  0x1d   :  { %4008 = vmatpush3.bf16.msra.mxu1 %v4851_v44  ;;  %v4262_v42 = vpack.c.bf16 %v1285_v40, %v1284_v39  ;;  %v1286_v46 = vld [vmem:[%s5574_s3 + $0x70] sm:$0xff]  ;;  %v1287_v47 = vld [vmem:[%s5574_s3 + $0x78] sm:$0xff] }
  0x1e   :  { %3978 = vmatpush3.bf16.msra.mxu0 %v4891_v56  ;;  %4010 = vmatprep.subr.bf16.mxu1 %v4855_v45  ;;  %v4265_v48 = vpack.c.bf16 %v1287_v47, %v1286_v46  ;;  %v2953_v46 = vld [vmem:[%s5571_s0 + $0xb0] sm:$0xf] }
  0x1f   :  { %3980 = vmatprep.subr.bf16.mxu0 %v4895_v57 }
  0x21   :  { %4012 = vmatpush3.bf16.msra.mxu1 %v4871_v50 }
  0x22   :  { %3982 = vmatpush3.bf16.msra.mxu0 %v4905_v60  ;;  %4014 = vmatprep.subr.bf16.mxu1 %v4875_v51 }
  0x23   :  { %4021 = vmatprep.subr.bf16.mxu0 %v4675_v3 }
  0x25   :  { %137 = vmatmul.mubr.f32.vlgmr.msra.gmra.mrb[0].mxu0 %v63_v35  ;;  %4016 = vmatpush3.bf16.msra.mxu1 %v4891_v56  ;;  %v4259_v35 = vpack.c.bf16 %v1283_v33, %v1282_v32 }
  0x26   :  { %4023 = vmatpush3.bf16.msra.mxu0 %v4742_v9  ;;  %4018 = vmatprep.subr.bf16.mxu1 %v4895_v57 }
  0x27   :  { %4024 = vmatprep.subr.bf16.mxu0 %v4675_v3  ;;  %3683 = vmatprep.mubr.msk.f32.mxu0 %vm4676_vm0, %v4677_v8 }
  0x29   :  { %4020 = vmatpush3.bf16.msra.mxu1 %v4905_v60 }
  0x2a   :  { %4026 = vmatpush3.bf16.msra.mxu0 %v4769_v18  ;;  %4059 = vmatprep.subr.bf16.mxu1 %v4675_v3 }
  0x2b   :  { %4028 = vmatprep.subr.bf16.mxu0 %v4729_v4 }
  0x2c   :  { %286 = vmatmul.mubr.f32.vlgmr.msra.gmra.mrb[2].mxu1 %v4829_v36 }
  0x2d   :  { %3684 = vmatmul.mubr.msk.f32.vlgmr.msra.gmra.mrb[2].mxu0 %vm69_vm1, %v2920_v62  ;;  %4061 = vmatpush3.bf16.msra.mxu1 %v4742_v9 }
  0x2e   :  { %4030 = vmatpush3.bf16.msra.mxu0 %v4744_v10  ;;  %4062 = vmatprep.subr.bf16.mxu1 %v4675_v3 }
  0x2f   :  { %4032 = vmatprep.subr.bf16.mxu0 %v4756_v14  ;;  %3694 = vmatprep.mubr.msk.f32.mxu1 %vm4676_vm0, %v4677_v8 }
  0x30   :  { %435 = vmatprep.mubr.f32.mxu0 %v367_v63  ;;  %v2943_v63 = vld [vmem:[%s5571_s0 + $0x18] sm:$0xff] }
  0x31   :  { %4064 = vmatpush3.bf16.msra.mxu1 %v4769_v18 }
  0x32   :  { %4034 = vmatpush3.bf16.msra.mxu0 %v4771_v19  ;;  %4066 = vmatprep.subr.bf16.mxu1 %v4729_v4 }
  0x33   :  { %4036 = vmatprep.subr.bf16.mxu0 %v4781_v22 }
  0x34   :  { %3695 = vmatmul.mubr.msk.f32.vlgmr.msra.gmra.mrb[4].mxu1 %vm69_vm1, %v2923_v1 }
  0x35   :  { %4068 = vmatpush3.bf16.msra.mxu1 %v4744_v10  ;;  %585 = vmatprep.mubr.f32.mxu1 %v517_v2 }
  0x36   :  { %4038 = vmatpush3.bf16.msra.mxu0 %v4800_v28  ;;  %4070 = vmatprep.subr.bf16.mxu1 %v4756_v14 }
  0x37   :  { %4040 = vmatprep.subr.bf16.mxu0 %v4804_v29 }
  0x39   :  { %4072 = vmatpush3.bf16.msra.mxu1 %v4771_v19 }
  0x3a   :  { %4042 = vmatpush3.bf16.msra.mxu0 %v4821_v34  ;;  %4074 = vmatprep.subr.bf16.mxu1 %v4781_v22 }
  0x3b   :  { %4044 = vmatprep.subr.bf16.mxu0 %v4833_v37 }
  0x3d   :  { %4076 = vmatpush3.bf16.msra.mxu1 %v4800_v28 }
  0x3e   :  { %4046 = vmatpush3.bf16.msra.mxu0 %v4851_v44  ;;  %4078 = vmatprep.subr.bf16.mxu1 %v4804_v29 }
  0x3f   :  { %4048 = vmatprep.subr.bf16.mxu0 %v4855_v45 }
  0x41   :  { %4080 = vmatpush3.bf16.msra.mxu1 %v4821_v34 }
  0x42   :  { %4050 = vmatpush3.bf16.msra.mxu0 %v4871_v50  ;;  %4082 = vmatprep.subr.bf16.mxu1 %v4833_v37 }
  0x43   :  { %4052 = vmatprep.subr.bf16.mxu0 %v4875_v51 }
  0x45   :  { %4084 = vmatpush3.bf16.msra.mxu1 %v4851_v44 }
  0x46   :  { %4054 = vmatpush3.bf16.msra.mxu0 %v4891_v56  ;;  %4086 = vmatprep.subr.bf16.mxu1 %v4855_v45 }
  0x47   :  { %4056 = vmatprep.subr.bf16.mxu0 %v4895_v57 }
  0x49   :  { %4088 = vmatpush3.bf16.msra.mxu1 %v4871_v50 }
  0x4a   :  { %4058 = vmatpush3.bf16.msra.mxu0 %v4905_v60  ;;  %4090 = vmatprep.subr.bf16.mxu1 %v4875_v51 }
  0x4b   :  { %4097 = vmatprep.subr.bf16.mxu0 %v4675_v3 }
  0x4d   :  { %436 = vmatmul.mubr.f32.vlgmr.msra.gmra.mrb[4].mxu0 %v2922_v61  ;;  %4092 = vmatpush3.bf16.msra.mxu1 %v4891_v56 }
  0x4e   :  { %4099 = vmatpush3.bf16.msra.mxu0 %v4742_v9  ;;  %4094 = vmatprep.subr.bf16.mxu1 %v4895_v57 }
  0x4f   :  { %4100 = vmatprep.subr.bf16.mxu0 %v4675_v3  ;;  %3705 = vmatprep.mubr.msk.f32.mxu0 %vm4676_vm0, %v4677_v8 }
  0x51   :  { %4096 = vmatpush3.bf16.msra.mxu1 %v4905_v60 }
  0x52   :  { %4102 = vmatpush3.bf16.msra.mxu0 %v4769_v18  ;;  %4135 = vmatprep.subr.bf16.mxu1 %v4675_v3 }
  0x53   :  { %4104 = vmatprep.subr.bf16.mxu0 %v4729_v4 }
  0x54   :  { %586 = vmatmul.mubr.f32.vlgmr.msra.gmra.mrb[6].mxu1 %v2925_v0  ;;  %v1440_v0 = vcombine.high %v2943_v63, %v2943_v63 }
  0x55   :  { %3706 = vmatmul.mubr.msk.f32.vlgmr.msra.gmra.mrb[6].mxu0 %vm69_vm1, %v2926_v6  ;;  %4137 = vmatpush3.bf16.msra.mxu1 %v4742_v9 }
  0x56   :  { %4106 = vmatpush3.bf16.msra.mxu0 %v4744_v10  ;;  %4138 = vmatprep.subr.bf16.mxu1 %v4675_v3 }
  0x57   :  { %4108 = vmatprep.subr.bf16.mxu0 %v4756_v14  ;;  %3716 = vmatprep.mubr.msk.f32.mxu1 %vm4676_vm0, %v4677_v8 }
  0x58   :  { %752 = vmatprep.mubr.f32.mxu0 %v684_v7 }
  0x59   :  { %4140 = vmatpush3.bf16.msra.mxu1 %v4769_v18 }
  0x5a   :  { %4110 = vmatpush3.bf16.msra.mxu0 %v4771_v19  ;;  %4142 = vmatprep.subr.bf16.mxu1 %v4729_v4 }
  0x5b   :  { %4112 = vmatprep.subr.bf16.mxu0 %v4781_v22 }
  0x5c   :  { %3717 = vmatmul.mubr.msk.f32.vlgmr.msra.gmra.mrb[8].mxu1 %vm69_vm1, %v2930_v12 }
  0x5d   :  { %4144 = vmatpush3.bf16.msra.mxu1 %v4744_v10  ;;  %901 = vmatprep.mubr.f32.mxu1 %v833_v13 }
  0x5e   :  { %4114 = vmatpush3.bf16.msra.mxu0 %v4800_v28  ;;  %4146 = vmatprep.subr.bf16.mxu1 %v4756_v14 }
  0x5f   :  { %4116 = vmatprep.subr.bf16.mxu0 %v4804_v29 }
  0x61   :  { %4148 = vmatpush3.bf16.msra.mxu1 %v4771_v19 }
  0x62   :  { %4118 = vmatpush3.bf16.msra.mxu0 %v4821_v34  ;;  %4150 = vmatprep.subr.bf16.mxu1 %v4781_v22 }
  0x63   :  { %4120 = vmatprep.subr.bf16.mxu0 %v4833_v37 }
  0x65   :  { %4152 = vmatpush3.bf16.msra.mxu1 %v4800_v28 }
  0x66   :  { %4122 = vmatpush3.bf16.msra.mxu0 %v4851_v44  ;;  %4154 = vmatprep.subr.bf16.mxu1 %v4804_v29 }
  0x67   :  { %4124 = vmatprep.subr.bf16.mxu0 %v4855_v45 }
  0x69   :  { %4156 = vmatpush3.bf16.msra.mxu1 %v4821_v34 }
  0x6a   :  { %4126 = vmatpush3.bf16.msra.mxu0 %v4871_v50  ;;  %4158 = vmatprep.subr.bf16.mxu1 %v4833_v37 }
  0x6b   :  { %4128 = vmatprep.subr.bf16.mxu0 %v4875_v51 }
  0x6d   :  { %4160 = vmatpush3.bf16.msra.mxu1 %v4851_v44 }
  0x6e   :  { %4130 = vmatpush3.bf16.msra.mxu0 %v4891_v56  ;;  %4162 = vmatprep.subr.bf16.mxu1 %v4855_v45 }
  0x6f   :  { %4132 = vmatprep.subr.bf16.mxu0 %v4895_v57 }
  0x71   :  { %4164 = vmatpush3.bf16.msra.mxu1 %v4871_v50 }
  0x72   :  { %4134 = vmatpush3.bf16.msra.mxu0 %v4905_v60  ;;  %4166 = vmatprep.subr.bf16.mxu1 %v4875_v51 }
  0x73   :  { %4173 = vmatprep.subr.bf16.mxu0 %v4675_v3 }
  0x75   :  { %753 = vmatmul.mubr.f32.vlgmr.msra.gmra.mrb[8].mxu0 %v2929_v5  ;;  %4168 = vmatpush3.bf16.msra.mxu1 %v4891_v56  ;;  %v2947_v5 = vld [vmem:[%s5571_s0 + $0x50] sm:$0xf] }
  0x76   :  { %4175 = vmatpush3.bf16.msra.mxu0 %v4742_v9  ;;  %4170 = vmatprep.subr.bf16.mxu1 %v4895_v57 }
  0x77   :  { %4176 = vmatprep.subr.bf16.mxu0 %v4675_v3  ;;  %3727 = vmatprep.mubr.msk.f32.mxu0 %vm4676_vm0, %v4677_v8 }
  0x79   :  { %4172 = vmatpush3.bf16.msra.mxu1 %v4905_v60 }
  0x7a   :  { %4178 = vmatpush3.bf16.msra.mxu0 %v4769_v18  ;;  %4211 = vmatprep.subr.bf16.mxu1 %v4675_v3 }
  0x7b   :  { %4180 = vmatprep.subr.bf16.mxu0 %v4729_v4 }
  0x7c   :  { %902 = vmatmul.mubr.f32.vlgmr.msra.gmra.mrb[10].mxu1 %v2932_v11 }
  0x7d   :  { %3728 = vmatmul.mubr.msk.f32.vlgmr.msra.gmra.mrb[10].mxu0 %vm69_vm1, %v2933_v16  ;;  %4213 = vmatpush3.bf16.msra.mxu1 %v4742_v9 }
  0x7e   :  { %4182 = vmatpush3.bf16.msra.mxu0 %v4744_v10  ;;  %4214 = vmatprep.subr.bf16.mxu1 %v4675_v3 }
  0x7f   :  { %4184 = vmatprep.subr.bf16.mxu0 %v4756_v14  ;;  %3738 = vmatprep.mubr.msk.f32.mxu1 %vm4676_vm0, %v4677_v8 }
  0x80   :  { %1051 = vmatprep.mubr.f32.mxu0 %v983_v17 }
  0x81   :  { %4216 = vmatpush3.bf16.msra.mxu1 %v4769_v18 }
  0x82   :  { %4186 = vmatpush3.bf16.msra.mxu0 %v4771_v19  ;;  %4218 = vmatprep.subr.bf16.mxu1 %v4729_v4 }
  0x83   :  { %4188 = vmatprep.subr.bf16.mxu0 %v4781_v22 }
  0x84   :  { %3739 = vmatmul.mubr.msk.f32.vlgmr.msra.gmra.mrb[12].mxu1 %vm69_vm1, %v2936_v21 }
  0x85   :  { %4220 = vmatpush3.bf16.msra.mxu1 %v4744_v10  ;;  %1201 = vmatprep.mubr.f32.mxu1 %v1133_v23 }
  0x86   :  { %4190 = vmatpush3.bf16.msra.mxu0 %v4800_v28  ;;  %4222 = vmatprep.subr.bf16.mxu1 %v4756_v14 }
  0x87   :  { %4192 = vmatprep.subr.bf16.mxu0 %v4804_v29 }
  0x89   :  { %4224 = vmatpush3.bf16.msra.mxu1 %v4771_v19 }
  0x8a   :  { %4194 = vmatpush3.bf16.msra.mxu0 %v4821_v34  ;;  %4226 = vmatprep.subr.bf16.mxu1 %v4781_v22 }
  0x8b   :  { %4196 = vmatprep.subr.bf16.mxu0 %v4833_v37 }
  0x8d   :  { %4228 = vmatpush3.bf16.msra.mxu1 %v4800_v28 }
  0x8e   :  { %4198 = vmatpush3.bf16.msra.mxu0 %v4851_v44  ;;  %4230 = vmatprep.subr.bf16.mxu1 %v4804_v29 }
  0x8f   :  { %4200 = vmatprep.subr.bf16.mxu0 %v4855_v45 }
  0x91   :  { %4232 = vmatpush3.bf16.msra.mxu1 %v4821_v34 }
  0x92   :  { %4202 = vmatpush3.bf16.msra.mxu0 %v4871_v50  ;;  %4234 = vmatprep.subr.bf16.mxu1 %v4833_v37 }
  0x93   :  { %4204 = vmatprep.subr.bf16.mxu0 %v4875_v51 }
  0x95   :  { %4236 = vmatpush3.bf16.msra.mxu1 %v4851_v44 }
  0x96   :  { %4206 = vmatpush3.bf16.msra.mxu0 %v4891_v56  ;;  %4238 = vmatprep.subr.bf16.mxu1 %v4855_v45 }
  0x97   :  { %4208 = vmatprep.subr.bf16.mxu0 %v4895_v57 }
  0x99   :  { %4240 = vmatpush3.bf16.msra.mxu1 %v4871_v50 }
  0x9a   :  { %4210 = vmatpush3.bf16.msra.mxu0 %v4905_v60  ;;  %4242 = vmatprep.subr.bf16.mxu1 %v4875_v51 }
  0x9b   :  { %4249 = vmatprep.subr.bf16.mxu0 %v4675_v3 }
  0x9d   :  { %1052 = vmatmul.mubr.f32.vlgmr.msra.gmra.mrb[12].mxu0 %v2935_v15  ;;  %4244 = vmatpush3.bf16.msra.mxu1 %v4891_v56 }
  0x9e   :  { %4251 = vmatpush3.bf16.msra.mxu0 %v4742_v9  ;;  %4246 = vmatprep.subr.bf16.mxu1 %v4895_v57 }
  0x9f   :  { %4252 = vmatprep.subr.bf16.mxu0 %v4675_v3  ;;  %3749 = vmatprep.mubr.msk.f32.mxu0 %vm4676_vm0, %v4677_v8 }
  0xa1   :  { %4248 = vmatpush3.bf16.msra.mxu1 %v4905_v60 }
  0xa2   :  { %4254 = vmatpush3.bf16.msra.mxu0 %v4769_v18  ;;  %4255 = vmatprep.subr.bf16.mxu1 %v4675_v3 }
  0xa3   :  { %4280 = vmatprep.subr.bf16.mxu0 %v4729_v4 }
  0xa4   :  { %1202 = vmatmul.mubr.f32.vlgmr.msra.gmra.mrb[14].mxu1 %v2938_v20 }
  0xa5   :  { %3750 = vmatmul.mubr.msk.f32.vlgmr.msra.gmra.mrb[14].mxu0 %vm69_vm1, %v2939_v24  ;;  %3768 = vmatprep.mubr.msk.f32.mxu1 %vm4676_vm0, %v4677_v8 }
  0xa6   :  { %4282 = vmatpush3.bf16.msra.mxu0 %v4744_v10  ;;  %4257 = vmatpush3.bf16.msra.mxu1 %v4256_v31 }
  0xa7   :  { %4284 = vmatprep.subr.bf16.mxu0 %v4756_v14  ;;  %4258 = vmatprep.subr.bf16.mxu1 %v4675_v3 }
  0xa8   :  { %1508 = vmatprep.mubr.f32.mxu0 %v1440_v0  ;;  %v671_v0 = vld [vmem:[%s5574_s3] sm:$0xff] }
  0xaa   :  { %4286 = vmatpush3.bf16.msra.mxu0 %v4771_v19  ;;  %4260 = vmatpush3.bf16.msra.mxu1 %v4259_v35 }
  0xab   :  { %4288 = vmatprep.subr.bf16.mxu0 %v4781_v22  ;;  %4261 = vmatprep.subr.bf16.mxu1 %v4675_v3 }
  0xae   :  { %4290 = vmatpush3.bf16.msra.mxu0 %v4800_v28  ;;  %4263 = vmatpush3.bf16.msra.mxu1 %v4262_v42 }
  0xaf   :  { %4292 = vmatprep.subr.bf16.mxu0 %v4804_v29  ;;  %4264 = vmatprep.subr.bf16.mxu1 %v4675_v3 }
  0xb2   :  { %4294 = vmatpush3.bf16.msra.mxu0 %v4821_v34  ;;  %4266 = vmatpush3.bf16.msra.mxu1 %v4265_v48 }
  0xb3   :  { %4296 = vmatprep.subr.bf16.mxu0 %v4833_v37  ;;  %4267 = vmatprep.subr.bf16.mxu1 %v4675_v3 }
  0xb6   :  { %4298 = vmatpush3.bf16.msra.mxu0 %v4851_v44 }
  0xb7   :  { %4300 = vmatprep.subr.bf16.mxu0 %v4855_v45 }
  0xba   :  { %4302 = vmatpush3.bf16.msra.mxu0 %v4871_v50 }
  0xbb   :  { %4304 = vmatprep.subr.bf16.mxu0 %v4875_v51 }
  0xbe   :  { %4306 = vmatpush3.bf16.msra.mxu0 %v4891_v56 }
  0xbf   :  { %4308 = vmatprep.subr.bf16.mxu0 %v4895_v57 }
  0xc2   :  { %4310 = vmatpush3.bf16.msra.mxu0 %v4905_v60 }
  0xc3   :  { %4349 = vmatprep.subr.bf16.mxu0 %v4675_v3 }
  0xc5   :  { %1509 = vmatmul.mubr.f32.vlgmr.msra.gmra.mrb[16].mxu0 %v2943_v63 }
  0xc6   :  { %4351 = vmatpush3.bf16.msra.mxu0 %v4742_v9  ;;  %3809 = vmatprep.mubr.msk.f32.mxu0 %vm4676_vm0, %v4677_v8 }
  0xc7   :  { %4352 = vmatprep.subr.bf16.mxu0 %v4675_v3 }
  0xca   :  { %4354 = vmatpush3.bf16.msra.mxu0 %v4769_v18 }
  0xcb   :  { %4356 = vmatprep.subr.bf16.mxu0 %v4729_v4 }
  0xcd   :  { %3810 = vmatmul.mubr.msk.f32.vlgmr.msra.gmra.mrb[18].mxu0 %vm69_vm1, %v2947_v5 }
  0xce   :  { %4358 = vmatpush3.bf16.msra.mxu0 %v4744_v10 }
  0xcf   :  { %4360 = vmatprep.subr.bf16.mxu0 %v4756_v14 }
  0xd2   :  { %4362 = vmatpush3.bf16.msra.mxu0 %v4771_v19 }
  0xd3   :  { %4364 = vmatprep.subr.bf16.mxu0 %v4781_v22 }
  0xd6   :  { %4366 = vmatpush3.bf16.msra.mxu0 %v4800_v28 }
  0xd7   :  { %4368 = vmatprep.subr.bf16.mxu0 %v4804_v29 }
  0xda   :  { %4370 = vmatpush3.bf16.msra.mxu0 %v4821_v34 }
  0xdb   :  { %4372 = vmatprep.subr.bf16.mxu0 %v4833_v37 }
  0xde   :  { %4374 = vmatpush3.bf16.msra.mxu0 %v4851_v44 }
  0xdf   :  { %v208_v25 = vpop.f32.mrb[0].mxu1  ;;  %4376 = vmatprep.subr.bf16.mxu0 %v4855_v45 }
  0xe0   :  { %v3674_v26 = vpop.f32.mrb[1].mxu1 }
  0xe2   :  { %4378 = vmatpush3.bf16.msra.mxu0 %v4871_v50 }
  0xe3   :  { %4380 = vmatprep.subr.bf16.mxu0 %v4875_v51 }
  0xe6   :  { %4382 = vmatpush3.bf16.msra.mxu0 %v4891_v56 }
  0xe7   :  { %4384 = vmatprep.subr.bf16.mxu0 %v4895_v57 }
  0xea   :  { %4386 = vmatpush3.bf16.msra.mxu0 %v4905_v60 }
  0xeb   :  { %4425 = vmatprep.subr.bf16.mxu0 %v4675_v3 }
  0xf8   :  { %v3003_v36 = vpop.f32.mrb[0].mxu0 }
  0xf9   :  { %v3004_v38 = vpop.f32.mrb[1].mxu0 }
  0xfa   :  { %v3005_v41 = vadd.f32 %v3004_v38, %v3003_v36 }
  0xfc   :  { %v209_v43 = vadd.f32 %v3005_v41, %v208_v25  ;;  %v2949_v25 = vld [vmem:[%s5571_s0 + $0x78] sm:$0xff] }
  0xfd   :  { %v1739_v26 = vcombine.high %v2949_v25, %v2949_v25 }
  0xff   :  { %v3043_v49 = vpop.f32.mrb[2].mxu1  ;;  %1807 = vmatprep.mubr.f32.mxu0 %v1739_v26 }
 0x100   :  { %v357_v52 = vpop.f32.mrb[2].mxu0  ;;  %v3044_v53 = vpop.f32.mrb[3].mxu1  ;;  %1808 = vmatmul.mubr.f32.vlgmr.msra.gmra.mrb[20].mxu0 %v2949_v25  ;;  %v678_v25 = vld [vmem:[%s5574_s3 + $0x38] sm:$0xff] }
 0x101   :  { %v3685_v54 = vpop.f32.mrb[3].mxu0  ;;  %v3045_v55 = vadd.f32 %v3044_v53, %v3043_v49  ;;  %4427 = vmatpush3.bf16.msra.mxu0 %v4742_v9  ;;  %3831 = vmatprep.mubr.msk.f32.mxu0 %vm4676_vm0, %v4677_v8 }
 0x102   :  { %4428 = vmatprep.subr.bf16.mxu0 %v4675_v3 }
 0x103   :  { %v358_v58 = vadd.f32 %v3045_v55, %v357_v52 }
 0x105   :  { %v361_v59 = vmax.f32 %v209_v43, %v358_v58  ;;  %4430 = vmatpush3.bf16.msra.mxu0 %v4769_v18 }
 0x106   :  { %4431 = vmatprep.subr.bf16.mxu0 %v4675_v3 }
 0x107   :  { %v507_v61 = vpop.f32.mrb[4].mxu1 }
 0x108   :  { %v3696_v62 = vpop.f32.mrb[5].mxu1  ;;  %3832 = vmatmul.mubr.msk.f32.vlgmr.msra.gmra.mrb[22].mxu0 %vm69_vm1, %v2953_v46  ;;  %v2036_v46 = vld [vmem:[%s5574_s3 + $0x80] sm:$0xff] }
 0x109   :  { %3850 = vmatprep.mubr.msk.f32.mxu0 %vm4676_vm0, %v4677_v8 }
 0x120   :  { %v3083_v1 = vpop.f32.mrb[4].mxu0 }
 0x121   :  { %v3084_v2 = vpop.f32.mrb[5].mxu0 }
 0x122   :  { %v3085_v6 = vadd.f32 %v3084_v2, %v3083_v1  ;;  %v672_v1 = vld [vmem:[%s5574_s3 + $0x8] sm:$0xff]  ;;  %v5207_v2 = vld [vmem:[%s5573_s2] ss:$0 sm:$0xff] }
 0x124   :  { %v508_v7 = vadd.f32 %v3085_v6, %v507_v61  ;;  %v4268_v6 = vpack.c.bf16 %v672_v1, %v671_v0  ;;  %v2956_v1 = vld [vmem:[%s5571_s0 + $0x24] sm:$0xff] }
 0x126   :  { %v5163_v11 = vmax.f32 %v361_v59, %v508_v7 }
 0x127   :  { %v3123_v12 = vpop.f32.mrb[6].mxu1 }
 0x128   :  { %v657_v13 = vpop.f32.mrb[6].mxu0  ;;  %v3124_v15 = vpop.f32.mrb[7].mxu1 }
 0x129   :  { %v3707_v16 = vpop.f32.mrb[7].mxu0  ;;  %v3125_v17 = vadd.f32 %v3124_v15, %v3123_v12  ;;  %v673_v12 = vld [vmem:[%s5574_s3 + $0x10] sm:$0xff] }
 0x12a   :  { %v675_v16 = vld [vmem:[%s5574_s3 + $0x20] sm:$0xff] }
 0x12b   :  { %v5168_v20 = vadd.f32 %v3125_v17, %v657_v13  ;;  %v674_v13 = vld [vmem:[%s5574_s3 + $0x18] sm:$0xff]  ;;  %v676_v17 = vld [vmem:[%s5574_s3 + $0x28] sm:$0xff] }
 0x12c   :  { %v4271_v15 = vpack.c.bf16 %v674_v13, %v673_v12 }
 0x12d   :  { %v661_v21 = vmax.f32 %v5163_v11, %v5168_v20  ;;  %v2946_v11 = vld [vmem:[%s5571_s0 + $0x48] sm:$0xff]  ;;  %v2944_v20 = vld [vmem:[%s5571_s0 + $0x20] sm:$0xf] }
 0x12f   :  { %v824_v23 = vpop.f32.mrb[8].mxu1 }
 0x130   :  { %v3718_v24 = vpop.f32.mrb[9].mxu1 }
 0x131   :  { %v677_v24 = vld [vmem:[%s5574_s3 + $0x30] sm:$0xff] }
 0x132   :  { %v4277_v26 = vpack.c.bf16 %v678_v25, %v677_v24 }
 0x148   :  { %v3163_v27 = vpop.f32.mrb[8].mxu0 }
 0x149   :  { %v3164_v30 = vpop.f32.mrb[9].mxu0 }
 0x14a   :  { %v3165_v31 = vadd.f32 %v3164_v30, %v3163_v27  ;;  %v669_v27 = vadd.f32 %v5207_v2, %v661_v21  ;;  %v1589_v21 = vcombine.high %v2946_v11, %v2946_v11 }
 0x14c   :  { %v825_v32 = vadd.f32 %v3165_v31, %v824_v23  ;;  %v4274_v23 = vpack.c.bf16 %v676_v17, %v675_v16  ;;  %v670_v30 = vmax.f32 %v669_v27, 0.0  ;;  %v2952_v31 = vld [vmem:[%s5571_s0 + $0xa8] sm:$0xff] }
 0x14d   :  { %v2962_v17 = vld [vmem:[%s5571_s0 + $0x84] sm:$0xff] }
 0x14f   :  { %v3203_v33 = vpop.f32.mrb[10].mxu1 }
 0x150   :  { %v973_v35 = vpop.f32.mrb[10].mxu0  ;;  %v3204_v36 = vpop.f32.mrb[11].mxu1 }
 0x151   :  { %v3729_v38 = vpop.f32.mrb[11].mxu0  ;;  %v3205_v39 = vadd.f32 %v3204_v36, %v3203_v33  ;;  %v1889_v33 = vcombine.high %v2952_v31, %v2952_v31 }
 0x153   :  { %v974_v40 = vadd.f32 %v3205_v39, %v973_v35 }
 0x155   :  { %v977_v41 = vmax.f32 %v825_v32, %v974_v40  ;;  %v2950_v32 = vld [vmem:[%s5571_s0 + $0x80] sm:$0xf] }
 0x157   :  { %v1123_v42 = vpop.f32.mrb[12].mxu1 }
 0x158   :  { %v3740_v43 = vpop.f32.mrb[13].mxu1 }
 0x170   :  { %v3243_v47 = vpop.f32.mrb[12].mxu0 }
 0x171   :  { %v3244_v48 = vpop.f32.mrb[13].mxu0 }
 0x172   :  { %v3245_v49 = vadd.f32 %v3244_v48, %v3243_v47  ;;  %v2037_v47 = vld [vmem:[%s5574_s3 + $0x88] sm:$0xff] }
 0x173   :  { %v4432_v48 = vpack.c.bf16 %v2037_v47, %v2036_v46 }
 0x174   :  { %v1124_v52 = vadd.f32 %v3245_v49, %v1123_v42  ;;  %v2038_v49 = vld [vmem:[%s5574_s3 + $0x90] sm:$0xff] }
 0x175   :  { %4433 = vmatpush3.bf16.msra.mxu0 %v4432_v48  ;;  %v2957_v48 = vld [vmem:[%s5571_s0 + $0x2c] sm:$0xf] }
 0x176   :  { %v1127_v53 = vmax.f32 %v977_v41, %v1124_v52  ;;  %4434 = vmatprep.subr.bf16.mxu0 %v4675_v3  ;;  %v2039_v52 = vld [vmem:[%s5574_s3 + $0x98] sm:$0xff] }
 0x177   :  { %v3283_v54 = vpop.f32.mrb[14].mxu1 }
 0x178   :  { %v1273_v55 = vpop.f32.mrb[14].mxu0  ;;  %v3284_v58 = vpop.f32.mrb[15].mxu1 }
 0x179   :  { %v3751_v59 = vpop.f32.mrb[15].mxu0  ;;  %v3285_v61 = vadd.f32 %v3284_v58, %v3283_v54  ;;  %v2040_v54 = vld [vmem:[%s5574_s3 + $0xa0] sm:$0xff] }
 0x17b   :  { %v1274_v62 = vadd.f32 %v3285_v61, %v1273_v55  ;;  %v2041_v55 = vld [vmem:[%s5574_s3 + $0xa8] sm:$0xff] }
 0x17c   :  { %v4438_v59 = vpack.c.bf16 %v2041_v55, %v2040_v54  ;;  %v2725_v55 = vld [vmem:[%s5574_s3 + $0xf0] sm:$0xff] }
 0x17d   :  { %v1277_v63 = vmax.f32 %v1127_v53, %v1274_v62  ;;  %v4435_v53 = vpack.c.bf16 %v2039_v52, %v2038_v49  ;;  %v2042_v62 = vld [vmem:[%s5574_s3 + $0xb0] sm:$0xff] }
 0x17e   :  { %v2965_v52 = vld [vmem:[%s5571_s0 + $0xb4] sm:$0xff] }
 0x17f   :  { %v1278_v5 = vadd.f32 %v5207_v2, %v1277_v63  ;;  %4436 = vmatpush3.bf16.msra.mxu0 %v4435_v53  ;;  %v2043_v63 = vld [vmem:[%s5574_s3 + $0xb8] sm:$0xff]  ;;  %v2963_v53 = vld [vmem:[%s5571_s0 + $0x8c] sm:$0xf]  ;;  %v2572_v54 = vcombine.high %v2965_v52, %v2965_v52 }
 0x180   :  { %4437 = vmatprep.subr.bf16.mxu0 %v4675_v3  ;;  %v4441_v0 = vpack.c.bf16 %v2043_v63, %v2042_v62  ;;  %v2811_v62 = vld [vmem:[%s5576_s5 + $0x8] sm:$0xff]  ;;  %v2812_v63 = vld [vmem:[%s5576_s5 + $0x10] sm:$0xff] }
 0x181   :  { %v1279_v7 = vmax.f32 %v1278_v5, 0.0  ;;  %v2123_v5 = vcombine.high %v2956_v1, %v2956_v1 }
 0x183   :  { %3769 = vmatmul.mubr.msk.f32.vlgmr.msra.gmra.mrb[16].mxu1 %vm1288_vm2, %v1279_v7  ;;  %4439 = vmatpush3.bf16.msra.mxu0 %v4438_v59 }
 0x184   :  { %4269 = vmatpush3.bf16.msra.mxu1 %v4268_v6  ;;  %3787 = vmatprep.mubr.msk.f32.mxu1 %vm4676_vm0, %v4677_v8  ;;  %v2960_v6 = vld [vmem:[%s5571_s0 + $0x5c] sm:$0xf] }
 0x185   :  { %4270 = vmatprep.subr.bf16.mxu1 %v4675_v3  ;;  %4440 = vmatprep.subr.bf16.mxu0 %v4675_v3 }
 0x187   :  { %4442 = vmatpush3.bf16.msra.mxu0 %v4441_v0 }
 0x188   :  { %4272 = vmatpush3.bf16.msra.mxu1 %v4271_v15  ;;  %4475 = vmatprep.subr.bf16.mxu0 %v4675_v3 }
 0x189   :  { %4273 = vmatprep.subr.bf16.mxu1 %v4675_v3 }
 0x18c   :  { %4275 = vmatpush3.bf16.msra.mxu1 %v4274_v23  ;;  %v2422_v23 = vcombine.high %v2962_v17, %v2962_v17 }
 0x18d   :  { %4276 = vmatprep.subr.bf16.mxu1 %v4675_v3 }
 0x190   :  { %4278 = vmatpush3.bf16.msra.mxu1 %v4277_v26 }
 0x191   :  { %4311 = vmatprep.subr.bf16.mxu1 %v4675_v3 }
 0x193   :  { %3788 = vmatmul.mubr.msk.f32.vlgmr.msra.gmra.mrb[18].mxu1 %vm1288_vm2, %v670_v30 }
 0x194   :  { %4313 = vmatpush3.bf16.msra.mxu1 %v4742_v9  ;;  %3798 = vmatprep.mubr.msk.f32.mxu1 %vm4676_vm0, %v4677_v8 }
 0x195   :  { %4314 = vmatprep.subr.bf16.mxu1 %v4675_v3 }
 0x198   :  { %4316 = vmatpush3.bf16.msra.mxu1 %v4769_v18  ;;  %v3341_v35 = vpop.f32.mrb[16].mxu0 }
 0x199   :  { %4318 = vmatprep.subr.bf16.mxu1 %v4729_v4  ;;  %v3342_v36 = vpop.f32.mrb[17].mxu0 }
 0x19a   :  { %v5304_v38 = vadd.f32 %v3342_v36, %v3341_v35 }
 0x19b   :  { %3799 = vmatmul.mubr.msk.f32.vlgmr.msra.gmra.mrb[20].mxu1 %vm69_vm1, %v2944_v20 }
 0x19c   :  { %4320 = vmatpush3.bf16.msra.mxu1 %v4744_v10  ;;  %1657 = vmatprep.mubr.f32.mxu1 %v1589_v21  ;;  %v2966_v21 = vld [vmem:[%s5571_s0 + $0xbc] sm:$0xf] }
 0x19d   :  { %4322 = vmatprep.subr.bf16.mxu1 %v4756_v14 }
 0x1a0   :  { %4324 = vmatpush3.bf16.msra.mxu1 %v4771_v19  ;;  %v5316_v39 = vpop.f32.mrb[18].mxu0 }
 0x1a1   :  { %4326 = vmatprep.subr.bf16.mxu1 %v4781_v22  ;;  %v3811_v40 = vpop.f32.mrb[19].mxu0 }
 0x1a4   :  { %4328 = vmatpush3.bf16.msra.mxu1 %v4800_v28 }
 0x1a5   :  { %4330 = vmatprep.subr.bf16.mxu1 %v4804_v29 }
 0x1a8   :  { %4332 = vmatpush3.bf16.msra.mxu1 %v4821_v34 }
 0x1a9   :  { %4334 = vmatprep.subr.bf16.mxu1 %v4833_v37 }
 0x1ac   :  { %4336 = vmatpush3.bf16.msra.mxu1 %v4851_v44 }
 0x1ad   :  { %4338 = vmatprep.subr.bf16.mxu1 %v4855_v45 }
 0x1b0   :  { %4340 = vmatpush3.bf16.msra.mxu1 %v4871_v50 }
 0x1b1   :  { %4342 = vmatprep.subr.bf16.mxu1 %v4875_v51 }
 0x1b4   :  { %4344 = vmatpush3.bf16.msra.mxu1 %v4891_v56 }
 0x1b5   :  { %4346 = vmatprep.subr.bf16.mxu1 %v4895_v57 }
 0x1b8   :  { %4348 = vmatpush3.bf16.msra.mxu1 %v4905_v60 }
 0x1b9   :  { %4387 = vmatprep.subr.bf16.mxu1 %v4675_v3 }
 0x1bb   :  { %1658 = vmatmul.mubr.f32.vlgmr.msra.gmra.mrb[22].mxu1 %v2946_v11 }
 0x1bc   :  { %4389 = vmatpush3.bf16.msra.mxu1 %v4742_v9  ;;  %3820 = vmatprep.mubr.msk.f32.mxu1 %vm4676_vm0, %v4677_v8 }
 0x1bd   :  { %4390 = vmatprep.subr.bf16.mxu1 %v4675_v3 }
 0x1c0   :  { %4392 = vmatpush3.bf16.msra.mxu1 %v4769_v18 }
 0x1c1   :  { %4394 = vmatprep.subr.bf16.mxu1 %v4729_v4 }
 0x1c3   :  { %3821 = vmatmul.mubr.msk.f32.vlgmr.msra.gmra.mrb[24].mxu1 %vm69_vm1, %v2950_v32 }
 0x1c4   :  { %4396 = vmatpush3.bf16.msra.mxu1 %v4744_v10  ;;  %1957 = vmatprep.mubr.f32.mxu1 %v1889_v33 }
 0x1c5   :  { %4398 = vmatprep.subr.bf16.mxu1 %v4756_v14 }
 0x1c8   :  { %4400 = vmatpush3.bf16.msra.mxu1 %v4771_v19 }
 0x1c9   :  { %4402 = vmatprep.subr.bf16.mxu1 %v4781_v22 }
 0x1cc   :  { %4404 = vmatpush3.bf16.msra.mxu1 %v4800_v28 }
 0x1cd   :  { %4406 = vmatprep.subr.bf16.mxu1 %v4804_v29 }
 0x1d0   :  { %4408 = vmatpush3.bf16.msra.mxu1 %v4821_v34 }
 0x1d1   :  { %4410 = vmatprep.subr.bf16.mxu1 %v4833_v37 }
 0x1d3   :  { %v3421_v41 = vpop.f32.mrb[20].mxu0 }
 0x1d4   :  { %4412 = vmatpush3.bf16.msra.mxu1 %v4851_v44  ;;  %v3422_v42 = vpop.f32.mrb[21].mxu0 }
 0x1d5   :  { %4414 = vmatprep.subr.bf16.mxu1 %v4855_v45  ;;  %v5318_v43 = vadd.f32 %v3422_v42, %v3421_v41 }
 0x1d8   :  { %4416 = vmatpush3.bf16.msra.mxu1 %v4871_v50 }
 0x1d9   :  { %4418 = vmatprep.subr.bf16.mxu1 %v4875_v51 }
 0x1db   :  { %v5340_v58 = vpop.f32.mrb[22].mxu0 }
 0x1dc   :  { %4420 = vmatpush3.bf16.msra.mxu1 %v4891_v56  ;;  %v3833_v61 = vpop.f32.mrb[23].mxu0 }
 0x1dd   :  { %4422 = vmatprep.subr.bf16.mxu1 %v4895_v57  ;;  %v2810_v61 = vld [vmem:[%s5576_s5] sm:$0xff] }
 0x1de   :  { %v4608_v0 = vpack.c.bf16 %v2811_v62, %v2810_v61 }
 0x1e0   :  { %4424 = vmatpush3.bf16.msra.mxu1 %v4905_v60 }
 0x1e1   :  { %4444 = vmatprep.subr.bf16.mxu1 %v4729_v4 }
 0x1e3   :  { %1958 = vmatmul.mubr.f32.vlgmr.msra.gmra.mrb[26].mxu1 %v2952_v31 }
 0x1e4   :  { %4446 = vmatpush3.bf16.msra.mxu1 %v4744_v10  ;;  %2191 = vmatprep.mubr.f32.mxu1 %v2123_v5 }
 0x1e5   :  { %4448 = vmatprep.subr.bf16.mxu1 %v4756_v14 }
 0x1e8   :  { %4450 = vmatpush3.bf16.msra.mxu1 %v4771_v19 }
 0x1e9   :  { %4452 = vmatprep.subr.bf16.mxu1 %v4781_v22 }
 0x1ec   :  { %4454 = vmatpush3.bf16.msra.mxu1 %v4800_v28 }
 0x1ed   :  { %4456 = vmatprep.subr.bf16.mxu1 %v4804_v29 }
 0x1f0   :  { %4458 = vmatpush3.bf16.msra.mxu1 %v4821_v34 }
 0x1f1   :  { %4460 = vmatprep.subr.bf16.mxu1 %v4833_v37 }
 0x1f4   :  { %4462 = vmatpush3.bf16.msra.mxu1 %v4851_v44 }
 0x1f5   :  { %4464 = vmatprep.subr.bf16.mxu1 %v4855_v45 }
 0x1f8   :  { %4466 = vmatpush3.bf16.msra.mxu1 %v4871_v50 }
 0x1f9   :  { %4468 = vmatprep.subr.bf16.mxu1 %v4875_v51 }
 0x1fc   :  { %4470 = vmatpush3.bf16.msra.mxu1 %v4891_v56 }
 0x1fd   :  { %4472 = vmatprep.subr.bf16.mxu1 %v4895_v57 }
 0x200   :  { %4474 = vmatpush3.bf16.msra.mxu1 %v4905_v60 }
 0x201   :  { %4513 = vmatprep.subr.bf16.mxu1 %v4675_v3 }
 0x203   :  { %2192 = vmatmul.mubr.f32.vlgmr.msra.gmra.mrb[28].mxu1 %v2956_v1  ;;  %v2813_v1 = vld [vmem:[%s5576_s5 + $0x18] sm:$0xff] }
 0x204   :  { %4515 = vmatpush3.bf16.msra.mxu1 %v4742_v9  ;;  %3872 = vmatprep.mubr.msk.f32.mxu1 %vm4676_vm0, %v4677_v8  ;;  %v4611_v5 = vpack.c.bf16 %v2813_v1, %v2812_v63 }
 0x205   :  { %4516 = vmatprep.subr.bf16.mxu1 %v4675_v3 }
 0x208   :  { %4518 = vmatpush3.bf16.msra.mxu1 %v4769_v18 }
 0x209   :  { %4520 = vmatprep.subr.bf16.mxu1 %v4729_v4 }
 0x20b   :  { %3873 = vmatmul.mubr.msk.f32.vlgmr.msra.gmra.mrb[30].mxu1 %vm69_vm1, %v2960_v6  ;;  %v2814_v6 = vld [vmem:[%s5576_s5 + $0x20] sm:$0xff] }
 0x20c   :  { %4522 = vmatpush3.bf16.msra.mxu1 %v4744_v10  ;;  %2490 = vmatprep.mubr.f32.mxu1 %v2422_v23  ;;  %v2818_v23 = vld [vmem:[%s5576_s5 + $0x40] sm:$0xff] }
 0x20d   :  { %4524 = vmatprep.subr.bf16.mxu1 %v4756_v14 }
 0x210   :  { %4526 = vmatpush3.bf16.msra.mxu1 %v4771_v19 }
 0x211   :  { %4528 = vmatprep.subr.bf16.mxu1 %v4781_v22 }
 0x214   :  { %4530 = vmatpush3.bf16.msra.mxu1 %v4800_v28 }
 0x215   :  { %4532 = vmatprep.subr.bf16.mxu1 %v4804_v29 }
 0x218   :  { %4534 = vmatpush3.bf16.msra.mxu1 %v4821_v34 }
 0x219   :  { %4536 = vmatprep.subr.bf16.mxu1 %v4833_v37 }
 0x21c   :  { %4538 = vmatpush3.bf16.msra.mxu1 %v4851_v44 }
 0x21d   :  { %4540 = vmatprep.subr.bf16.mxu1 %v4855_v45 }
 0x220   :  { %4542 = vmatpush3.bf16.msra.mxu1 %v4871_v50 }
 0x221   :  { %4544 = vmatprep.subr.bf16.mxu1 %v4875_v51 }
 0x224   :  { %4546 = vmatpush3.bf16.msra.mxu1 %v4891_v56 }
 0x225   :  { %4548 = vmatprep.subr.bf16.mxu1 %v4895_v57 }
 0x228   :  { %4550 = vmatpush3.bf16.msra.mxu1 %v4905_v60 }
 0x229   :  { %4589 = vmatprep.subr.bf16.mxu1 %v4675_v3 }
 0x22b   :  { %2491 = vmatmul.mubr.f32.vlgmr.msra.gmra.mrb[32].mxu1 %v2962_v17 }
 0x22c   :  { %4591 = vmatpush3.bf16.msra.mxu1 %v4742_v9  ;;  %3894 = vmatprep.mubr.msk.f32.mxu1 %vm4676_vm0, %v4677_v8 }
 0x22d   :  { %4592 = vmatprep.subr.bf16.mxu1 %v4675_v3 }
 0x230   :  { %4594 = vmatpush3.bf16.msra.mxu1 %v4769_v18 }
 0x231   :  { %4595 = vmatprep.subr.bf16.mxu1 %v4675_v3 }
 0x233   :  { %3895 = vmatmul.mubr.msk.f32.vlgmr.msra.gmra.mrb[34].mxu1 %vm69_vm1, %v2966_v21 }
 0x234   :  { %3913 = vmatprep.mubr.msk.f32.mxu1 %vm4676_vm0, %v4677_v8 }
 0x256   :  { %v1358_v7 = vpop.f32.mrb[16].mxu1 }
 0x257   :  { %v3770_v12 = vpop.f32.mrb[17].mxu1 }
 0x266   :  { %v1431_v13 = vpop.f32.mrb[18].mxu1 }
 0x267   :  { %v5375_v15 = vadd.f32 %v1431_v13, %v1358_v7  ;;  %v3789_v16 = vpop.f32.mrb[19].mxu1  ;;  %v2815_v7 = vld [vmem:[%s5576_s5 + $0x28] sm:$0xff]  ;;  %v2816_v13 = vld [vmem:[%s5576_s5 + $0x30] sm:$0xff] }
 0x268   :  { %v4614_v12 = vpack.c.bf16 %v2815_v7, %v2814_v6  ;;  %v2817_v16 = vld [vmem:[%s5576_s5 + $0x38] sm:$0xff] }
 0x269   :  { %v4617_v17 = vpack.c.bf16 %v2817_v16, %v2816_v13 }
 0x26e   :  { %v1580_v24 = vpop.f32.mrb[20].mxu1 }
 0x26f   :  { %v1581_v25 = vadd.f32 %v5304_v38, %v1580_v24  ;;  %v3800_v26 = vpop.f32.mrb[21].mxu1  ;;  %v2819_v24 = vld [vmem:[%s5576_s5 + $0x48] sm:$0xff] }
 0x270   :  { %v2820_v26 = vld [vmem:[%s5576_s5 + $0x50] sm:$0xff] }
 0x28e   :  { %v3381_v27 = vpop.f32.mrb[22].mxu1 }
 0x28f   :  { %v3382_v30 = vpop.f32.mrb[23].mxu1 }
 0x290   :  { %v3383_v11 = vadd.f32 %v3382_v30, %v3381_v27  ;;  %v2821_v27 = vld [vmem:[%s5576_s5 + $0x58] sm:$0xff] }
 0x291   :  { %v4623_v30 = vpack.c.bf16 %v2821_v27, %v2820_v26 }
 0x292   :  { %v1730_v20 = vadd.f32 %v3383_v11, %v5316_v39 }
 0x294   :  { %v1733_v31 = vmax.f32 %v1581_v25, %v1730_v20  ;;  %v4620_v25 = vpack.c.bf16 %v2819_v24, %v2818_v23 }
 0x296   :  { %v1879_v32 = vpop.f32.mrb[24].mxu1 }
 0x297   :  { %v1880_v33 = vadd.f32 %v5318_v43, %v1879_v32  ;;  %v3822_v35 = vpop.f32.mrb[25].mxu1  ;;  %v2959_v43 = vld [vmem:[%s5571_s0 + $0x54] sm:$0xff] }
 0x298   :  { %v2272_v49 = vcombine.high %v2959_v43, %v2959_v43 }
 0x299   :  { %v1883_v36 = vmax.f32 %v1733_v31, %v1880_v33 }
 0x2b6   :  { %v3461_v38 = vpop.f32.mrb[26].mxu1 }
 0x2b7   :  { %v3462_v40 = vpop.f32.mrb[27].mxu1 }
 0x2b8   :  { %v3463_v41 = vadd.f32 %v3462_v40, %v3461_v38 }
 0x2ba   :  { %v2030_v39 = vadd.f32 %v3463_v41, %v5340_v58  ;;  %v2726_v58 = vld [vmem:[%s5574_s3 + $0xf8] sm:$0xff] }
 0x2bb   :  { %v4605_v59 = vpack.c.bf16 %v2726_v58, %v2725_v55 }
 0x2bc   :  { %v2033_v42 = vmax.f32 %v1883_v36, %v2030_v39 }
 0x2be   :  { %v2034_v46 = vadd.f32 %v5207_v2, %v2033_v42 }
 0x2c0   :  { %v2035_v47 = vmax.f32 %v2034_v46, 0.0 }
 0x2c2   :  { %3851 = vmatmul.mubr.msk.f32.vlgmr.msra.gmra.mrb[24].mxu0 %vm1288_vm2, %v2035_v47 }
 0x2c3   :  { %4477 = vmatpush3.bf16.msra.mxu0 %v4742_v9  ;;  %3861 = vmatprep.mubr.msk.f32.mxu0 %vm4676_vm0, %v4677_v8 }
 0x2c4   :  { %4478 = vmatprep.subr.bf16.mxu0 %v4675_v3 }
 0x2c7   :  { %4480 = vmatpush3.bf16.msra.mxu0 %v4769_v18 }
 0x2c8   :  { %4482 = vmatprep.subr.bf16.mxu0 %v4729_v4 }
 0x2ca   :  { %3862 = vmatmul.mubr.msk.f32.vlgmr.msra.gmra.mrb[26].mxu0 %vm69_vm1, %v2957_v48 }
 0x2cb   :  { %4484 = vmatpush3.bf16.msra.mxu0 %v4744_v10  ;;  %2340 = vmatprep.mubr.f32.mxu0 %v2272_v49 }
 0x2cc   :  { %4486 = vmatprep.subr.bf16.mxu0 %v4756_v14 }
 0x2cf   :  { %4488 = vmatpush3.bf16.msra.mxu0 %v4771_v19 }
 0x2d0   :  { %4490 = vmatprep.subr.bf16.mxu0 %v4781_v22 }
 0x2d3   :  { %4492 = vmatpush3.bf16.msra.mxu0 %v4800_v28 }
 0x2d4   :  { %4494 = vmatprep.subr.bf16.mxu0 %v4804_v29 }
 0x2d7   :  { %4496 = vmatpush3.bf16.msra.mxu0 %v4821_v34 }
 0x2d8   :  { %4498 = vmatprep.subr.bf16.mxu0 %v4833_v37 }
 0x2db   :  { %4500 = vmatpush3.bf16.msra.mxu0 %v4851_v44 }
 0x2dc   :  { %4502 = vmatprep.subr.bf16.mxu0 %v4855_v45 }
 0x2df   :  { %4504 = vmatpush3.bf16.msra.mxu0 %v4871_v50 }
 0x2e0   :  { %4506 = vmatprep.subr.bf16.mxu0 %v4875_v51 }
 0x2e3   :  { %4508 = vmatpush3.bf16.msra.mxu0 %v4891_v56 }
 0x2e4   :  { %4510 = vmatprep.subr.bf16.mxu0 %v4895_v57 }
 0x2e7   :  { %4512 = vmatpush3.bf16.msra.mxu0 %v4905_v60 }
 0x2e8   :  { %4551 = vmatprep.subr.bf16.mxu0 %v4675_v3 }
 0x2ea   :  { %2341 = vmatmul.mubr.f32.vlgmr.msra.gmra.mrb[28].mxu0 %v2959_v43 }
 0x2eb   :  { %4553 = vmatpush3.bf16.msra.mxu0 %v4742_v9  ;;  %3883 = vmatprep.mubr.msk.f32.mxu0 %vm4676_vm0, %v4677_v8 }
 0x2ec   :  { %4554 = vmatprep.subr.bf16.mxu0 %v4675_v3 }
 0x2ef   :  { %4556 = vmatpush3.bf16.msra.mxu0 %v4769_v18 }
 0x2f0   :  { %4558 = vmatprep.subr.bf16.mxu0 %v4729_v4  ;;  %v3510_v4 = vpop.f32.mrb[28].mxu1 }
 0x2f1   :  { %v3511_v9 = vpop.f32.mrb[29].mxu1 }
 0x2f2   :  { %3884 = vmatmul.mubr.msk.f32.vlgmr.msra.gmra.mrb[30].mxu0 %vm69_vm1, %v2963_v53 }
 0x2f3   :  { %4560 = vmatpush3.bf16.msra.mxu0 %v4744_v10  ;;  %2640 = vmatprep.mubr.f32.mxu0 %v2572_v54  ;;  %v3512_v10 = vadd.f32 %v3511_v9, %v3510_v4  ;;  %v2822_v4 = vld [vmem:[%s5576_s5 + $0x60] sm:$0xff]  ;;  %v2823_v9 = vld [vmem:[%s5576_s5 + $0x68] sm:$0xff] }
 0x2f4   :  { %4562 = vmatprep.subr.bf16.mxu0 %v4756_v14  ;;  %v5462_v14 = vpop.f32.mrb[30].mxu1 }
 0x2f5   :  { %v3874_v18 = vpop.f32.mrb[31].mxu1 }
 0x2f7   :  { %4564 = vmatpush3.bf16.msra.mxu0 %v4771_v19 }
 0x2f8   :  { %4566 = vmatprep.subr.bf16.mxu0 %v4781_v22 }
 0x2fb   :  { %4568 = vmatpush3.bf16.msra.mxu0 %v4800_v28 }
 0x2fc   :  { %4570 = vmatprep.subr.bf16.mxu0 %v4804_v29  ;;  %v2719_v29 = vld [vmem:[%s5574_s3 + $0xc0] sm:$0xff] }
 0x2fe   :  { %v3590_v19 = vpop.f32.mrb[32].mxu1 }
 0x2ff   :  { %4572 = vmatpush3.bf16.msra.mxu0 %v4821_v34  ;;  %v3591_v22 = vpop.f32.mrb[33].mxu1  ;;  %v2720_v34 = vld [vmem:[%s5574_s3 + $0xc8] sm:$0xff] }
 0x300   :  { %4574 = vmatprep.subr.bf16.mxu0 %v4833_v37  ;;  %v5464_v28 = vadd.f32 %v3591_v22, %v3590_v19  ;;  %v4596_v37 = vpack.c.bf16 %v2720_v34, %v2719_v29  ;;  %v2969_v22 = vld [vmem:[%s5575_s4] ss:$0 sm:$0xff] }
 0x302   :  { %4597 = vmatpush3.bf16.msra.mxu1 %v4596_v37 }
 0x303   :  { %4576 = vmatpush3.bf16.msra.mxu0 %v4851_v44  ;;  %4598 = vmatprep.subr.bf16.mxu1 %v4675_v3  ;;  %v2722_v44 = vld [vmem:[%s5574_s3 + $0xd8] sm:$0xff] }
 0x304   :  { %4578 = vmatprep.subr.bf16.mxu0 %v4855_v45 }
 0x307   :  { %4580 = vmatpush3.bf16.msra.mxu0 %v4871_v50  ;;  %v2712_v50 = vpop.f32.mrb[34].mxu1 }
 0x308   :  { %4582 = vmatprep.subr.bf16.mxu0 %v4875_v51  ;;  %v2723_v51 = vld [vmem:[%s5574_s3 + $0xe0] sm:$0xff] }
 0x30b   :  { %4584 = vmatpush3.bf16.msra.mxu0 %v4891_v56  ;;  %v2724_v56 = vld [vmem:[%s5574_s3 + $0xe8] sm:$0xff] }
 0x30c   :  { %4586 = vmatprep.subr.bf16.mxu0 %v4895_v57  ;;  %v3896_v57 = vpop.f32.mrb[35].mxu1 }
 0x30f   :  { %4588 = vmatpush3.bf16.msra.mxu0 %v4905_v60  ;;  %v4602_v60 = vpack.c.bf16 %v2724_v56, %v2723_v51 }
 0x310   :  { %4607 = vmatprep.subr.bf16.mxu0 %v4675_v3 }
 0x312   :  { %2641 = vmatmul.mubr.f32.vlgmr.msra.gmra.mrb[32].mxu0 %v2965_v52 }
 0x313   :  { %3948 = vmatprep.mubr.msk.f32.mxu0 %vm4676_vm0, %v4677_v8  ;;  %v2721_v8 = vld [vmem:[%s5574_s3 + $0xd0] sm:$0xff]  ;;  %4609 = vmatpush3.bf16.msra.mxu0 %v4608_v0 }
 0x314   :  { %v4599_v45 = vpack.c.bf16 %v2722_v44, %v2721_v8  ;;  %4610 = vmatprep.subr.bf16.mxu0 %v4675_v3 }
 0x316   :  { %4600 = vmatpush3.bf16.msra.mxu1 %v4599_v45 }
 0x317   :  { %4601 = vmatprep.subr.bf16.mxu1 %v4675_v3  ;;  %4612 = vmatpush3.bf16.msra.mxu0 %v4611_v5 }
 0x318   :  { %4613 = vmatprep.subr.bf16.mxu0 %v4675_v3 }
 0x31a   :  { %4603 = vmatpush3.bf16.msra.mxu1 %v4602_v60 }
 0x31b   :  { %4604 = vmatprep.subr.bf16.mxu1 %v4675_v3  ;;  %4615 = vmatpush3.bf16.msra.mxu0 %v4614_v12 }
 0x31c   :  { %4616 = vmatprep.subr.bf16.mxu0 %v4675_v3 }
 0x31e   :  { %4606 = vmatpush3.bf16.msra.mxu1 %v4605_v59 }
 0x31f   :  { %4618 = vmatpush3.bf16.msra.mxu0 %v4617_v17 }
 0x320   :  { %4619 = vmatprep.subr.bf16.mxu0 %v4675_v3 }
 0x323   :  { %4621 = vmatpush3.bf16.msra.mxu0 %v4620_v25 }
 0x324   :  { %4622 = vmatprep.subr.bf16.mxu0 %v4675_v3 }
 0x327   :  { %4624 = vmatpush3.bf16.msra.mxu0 %v4623_v30 }
 0x328   :  { %4625 = vmatprep.subr.bf16.mxu0 %v4675_v3 }
 0x395   :  { %v2113_v11 = vpop.f32.mrb[24].mxu0 }
 0x396   :  { %v2117_v20 = vadd.f32 %v2113_v11, %v5375_v15  ;;  %v3852_v21 = vpop.f32.mrb[25].mxu0 }
 0x39d   :  { %v2263_v31 = vpop.f32.mrb[26].mxu0 }
 0x39e   :  { %v2264_v32 = vadd.f32 %v3512_v10, %v2263_v31  ;;  %v3863_v33 = vpop.f32.mrb[27].mxu0  ;;  %v4626_v10 = vpack.c.bf16 %v2823_v9, %v2822_v4 }
 0x3a0   :  { %4627 = vmatpush3.bf16.msra.mxu0 %v4626_v10 }
 0x3a1   :  { %4628 = vmatprep.subr.bf16.mxu0 %v4675_v3  ;;  %v2970_v3 = vld [vmem:[%s5577_s6] ss:$0 sm:$0xff] }
 0x3bd   :  { %v3550_v35 = vpop.f32.mrb[28].mxu0 }
 0x3be   :  { %v3551_v36 = vpop.f32.mrb[29].mxu0 }
 0x3bf   :  { %v3552_v38 = vadd.f32 %v3551_v36, %v3550_v35 }
 0x3c1   :  { %v2413_v40 = vadd.f32 %v3552_v38, %v5462_v14  ;;  %v2824_v14 = vld [vmem:[%s5576_s5 + $0x70] sm:$0xff] }
 0x3c3   :  { %v2416_v41 = vmax.f32 %v2264_v32, %v2413_v40 }
 0x3c5   :  { %v2562_v39 = vpop.f32.mrb[30].mxu0 }
 0x3c6   :  { %v2563_v42 = vadd.f32 %v5464_v28, %v2562_v39  ;;  %v3885_v46 = vpop.f32.mrb[31].mxu0 }
 0x3c8   :  { %v2566_v47 = vmax.f32 %v2416_v41, %v2563_v42 }
 0x3e5   :  { %v3630_v43 = vpop.f32.mrb[32].mxu0 }
 0x3e6   :  { %v3631_v48 = vpop.f32.mrb[33].mxu0 }
 0x3e7   :  { %v3632_v49 = vadd.f32 %v3631_v48, %v3630_v43 }
 0x3e9   :  { %v2713_v52 = vadd.f32 %v3632_v49, %v2712_v50 }
 0x3eb   :  { %v2716_v15 = vmax.f32 %v2566_v47, %v2713_v52 }
 0x3ed   :  { %v2717_v53 = vadd.f32 %v5207_v2, %v2716_v15  ;;  %v2825_v2 = vld [vmem:[%s5576_s5 + $0x78] sm:$0xff]  ;;  %s4651_s5 = scalar_lea.vmem %s2911_s18, 64 }
 0x3ee   :  { %v4629_v18 = vpack.c.bf16 %v2825_v2, %v2824_v14  ;;  %p4652_p0 = scmp.ne.s32.totalorder %s2911_s18, %s4651_s5  ;;  %p4657_p2 = scmp.lt.s32.totalorder %s4651_s5, %s4651_s5 }
 0x3ef   :  { %v2718_v54 = vmax.f32 %v2717_v53, 0.0 }
 0x3f0   :  { %4630 = vmatpush3.bf16.msra.mxu0 %v4629_v18  ;;  %p4658_p3 = por %p4657_p2, %p4656_p1 }
 0x3f1   :  { %3914 = vmatmul.mubr.msk.f32.vlgmr.msra.gmra.mrb[36].mxu1 %vm1288_vm2, %v2718_v54 }
 0x3f2   :  { %p4659_p4 = pnand %p4658_p3, %p4652_p0 }
 0x4c4   :  { %v2796_v19 = vpop.f32.mrb[36].mxu1 }
 0x4c5   :  { %v2800_v28 = vadd.f32 %v2796_v19, %v2117_v20  ;;  %v3915_v29 = vpop.f32.mrb[37].mxu1 }
 0x4c7   :  { %v2808_v34 = vadd.f32 %v2969_v22, %v2800_v28 }
 0x4c9   :  { %v2809_v37 = vmax.f32 %v2808_v34, 0.0 }
 0x4cb   :  { %3949 = vmatmul.mubr.f32.vlgmr.msra.gmra.mrb[34].mxu0 %v2809_v37 }
 0x59e   :  { %v2899_v8 = vpop.f32.mrb[34].mxu0 }
 0x59f   :  { %v2900_v44 = vadd.f32 %v2970_v3, %v2899_v8  ;;  %v3950_v45 = vpop.f32.mrb[35].mxu0 }
 0x5a1   :  { %2903 = vst [vmem:[#allocation2] sm:$0xf] %v2900_v44 }
 0x5a2   :  { %4662 = shalt.err (!%p4659_p4)
}
 0x5a3   :  { %s4663_s19 = scalar_lea.hbm %s5578_s7, 64 }
 0x5a4   :  { %p4664_p5 = scmp.ne.s32.totalorder %s5578_s7, %s4663_s19  ;;  %p4667_p6 = scmp.lt.u32.totalorder %s4663_s19, %s5578_s7 }
 0x5a6   :  { %p4669_p7 = pnand %p4667_p6, %p4664_p5 }
 0x5a8   :  { %4672 = shalt.err (!%p4669_p7)
}
 0x5a9   :  { %2913 = dma.vmem_to_hbm [thread:$0]  %s2911_s18, 64, %s5578_s7, [#allocation3]  }
 0x5aa   :  { %4673 = dma.done.wait [#allocation3], 64  }
 0x5ab   :  { %4674 = vsyncadd [#allocation3], 4294967232 }
 0x5ac   :  { %2917 = vsyncpa [#allocation3], 1 }

</bundles_post_ra>
